<compile_context>
chip_gen: v7x
topology: tpu7x:2x2x1
jax: 0.10.0
libtpu: 0.0.40
codegen_flags: <defaults>
</compile_context>

<pallas_src>
import math

import jax
import jax.numpy as jnp
from jax.experimental import pallas as pl
from jax.experimental.pallas import tpu as pltpu


HIDDEN = 256
LANE = 128


def _round_up(x, m):
    return ((x + m - 1) // m) * m


def _make_psl_kernel(bounded: bool):
    def psl_mlp_kernel(
        pref_ref,
        w1_ref, b1_ref,
        w2_ref, b2_ref,
        w3_ref, b3_ref,
        w4_ref, b4_ref,
        w5_ref, b5_ref,
        scale_ref, lb_ref,
        out_ref,
    ):
        # (TB, K_PAD) bf16 preference tile.
        x = pref_ref[...]

        # Layer 1: (TB, K_PAD) @ (K_PAD, H) -> f32 acc, bias + ReLU in f32.
        h = jnp.dot(x, w1_ref[...], preferred_element_type=jnp.float32) + b1_ref[...]
        h = jnp.maximum(h, 0.0)

        # Layers 2-4: (TB, H) @ (H, H); bf16 MXU inputs, f32 accumulation.
        h = jnp.dot(h.astype(jnp.bfloat16), w2_ref[...],
                    preferred_element_type=jnp.float32) + b2_ref[...]
        h = jnp.maximum(h, 0.0)
        h = jnp.dot(h.astype(jnp.bfloat16), w3_ref[...],
                    preferred_element_type=jnp.float32) + b3_ref[...]
        h = jnp.maximum(h, 0.0)
        h = jnp.dot(h.astype(jnp.bfloat16), w4_ref[...],
                    preferred_element_type=jnp.float32) + b4_ref[...]
        h = jnp.maximum(h, 0.0)

        # Layer 5: (TB, H) @ (H, N_PAD) + bias.
        z = jnp.dot(h.astype(jnp.bfloat16), w5_ref[...],
                    preferred_element_type=jnp.float32) + b5_ref[...]

        if bounded:
            # Sigmoid on the EUP (exp + approx reciprocal), then rescale to
            # [lbound, ubound].
            mid = pl.reciprocal(1.0 + jnp.exp(-z), approx=True)
            out_ref[...] = mid * scale_ref[...] + lb_ref[...]
        else:
            out_ref[...] = z

    return psl_mlp_kernel


def simple_psl_forward(pref, params, lbound=None, ubound=None, *, tb=256):
    """SimplePSLModel forward via a batch-gridded pallas_call.

    If lbound/ubound are given, runs the bounded branch (sigmoid + rescale);
    otherwise the raw-MLP branch.
    """
    bounded = lbound is not None and ubound is not None

    B, n_obj = pref.shape
    n_var = params["w5"].shape[1]

    k_pad = _round_up(n_obj, LANE)          # padded contraction dim of layer 1
    n_pad = _round_up(n_var, LANE)          # padded output lane dim
    tb = max(8, min(tb, _round_up(B, 8)))   # don't over-pad tiny batches
    b_pad = _round_up(B, tb)                # padded batch (grid-tile multiple)

    f32, bf16 = jnp.float32, jnp.bfloat16

    # --- Zero-padded, lane-dense operands (padding changes no results). ---
    pref_p = jnp.zeros((b_pad, k_pad), f32).at[:B, :n_obj].set(pref).astype(bf16)

    def pad_weight(w, rows, cols):
        return (jnp.zeros((rows, cols), f32)
                .at[: w.shape[0], : w.shape[1]].set(w).astype(bf16))

    def pad_row(v, cols):
        v = jnp.asarray(v).reshape(1, -1).astype(f32)
        return jnp.zeros((1, cols), f32).at[:, : v.shape[1]].set(v)

    w1 = pad_weight(params["w1"], k_pad, HIDDEN)
    w2 = params["w2"].astype(bf16)
    w3 = params["w3"].astype(bf16)
    w4 = params["w4"].astype(bf16)
    w5 = pad_weight(params["w5"], HIDDEN, n_pad)

    b1 = params["b1"].reshape(1, HIDDEN).astype(f32)
    b2 = params["b2"].reshape(1, HIDDEN).astype(f32)
    b3 = params["b3"].reshape(1, HIDDEN).astype(f32)
    b4 = params["b4"].reshape(1, HIDDEN).astype(f32)
    b5 = pad_row(params["b5"], n_pad)

    if bounded:
        scale = pad_row(jnp.asarray(ubound) - jnp.asarray(lbound), n_pad)
        lb = pad_row(lbound, n_pad)
    else:
        # Unused by the unbounded kernel; tiny constant operands keep the
        # calling convention identical for both branches.
        scale = jnp.ones((1, n_pad), f32)
        lb = jnp.zeros((1, n_pad), f32)

    # --- Grid & specs: batch tiles stream, weights pinned in VMEM. ---
    grid = (b_pad // tb,)

    def resident(shape):
        return pl.BlockSpec(shape, lambda i: (0, 0))

    in_specs = [
        pl.BlockSpec((tb, k_pad), lambda i: (i, 0)),        # pref tile
        resident((k_pad, HIDDEN)), resident((1, HIDDEN)),   # w1, b1
        resident((HIDDEN, HIDDEN)), resident((1, HIDDEN)),  # w2, b2
        resident((HIDDEN, HIDDEN)), resident((1, HIDDEN)),  # w3, b3
        resident((HIDDEN, HIDDEN)), resident((1, HIDDEN)),  # w4, b4
        resident((HIDDEN, n_pad)), resident((1, n_pad)),    # w5, b5
        resident((1, n_pad)), resident((1, n_pad)),         # scale, lb
    ]
    out_spec = pl.BlockSpec((tb, n_pad), lambda i: (i, 0))

    flops = 2 * B * (n_obj * HIDDEN + 3 * HIDDEN * HIDDEN + HIDDEN * n_var)
    bytes_accessed = (
        2 * (k_pad * HIDDEN + 3 * HIDDEN * HIDDEN + HIDDEN * n_pad)  # bf16 weights
        + 4 * (4 * HIDDEN + 3 * n_pad)                               # f32 biases/scale/lb
        + b_pad * (2 * k_pad + 4 * n_pad)                            # pref in + out
    )
    cost = pl.CostEstimate(
        flops=flops,
        transcendentals=(B * n_var) if bounded else 0,
        bytes_accessed=bytes_accessed,
    )

    out_p = pl.pallas_call(
        _make_psl_kernel(bounded),
        out_shape=jax.ShapeDtypeStruct((b_pad, n_pad), jnp.float32),
        grid=grid,
        in_specs=in_specs,
        out_specs=out_spec,
        compiler_params=pltpu.CompilerParams(
            dimension_semantics=("parallel",),
        ),
        cost_estimate=cost,
    )(pref_p, w1, b1, w2, b2, w3, b3, w4, b4, w5, b5, scale, lb)

    return out_p[:B, :n_var]


def init_linear(key, fan_in, fan_out):
    """Matches torch.nn.Linear default init: U[-1/sqrt(fan_in), 1/sqrt(fan_in)]."""
    kw, kb = jax.random.split(key)
    bound = 1.0 / math.sqrt(fan_in)
    w = jax.random.uniform(kw, (fan_in, fan_out), jnp.float32, -bound, bound)
    b = jax.random.uniform(kb, (1, fan_out), jnp.float32, -bound, bound)
    return w, b


def init_params(key, n_obj, n_var, hidden=HIDDEN):
    keys = jax.random.split(key, 5)
    w1, b1 = init_linear(keys[0], n_obj, hidden)
    w2, b2 = init_linear(keys[1], hidden, hidden)
    w3, b3 = init_linear(keys[2], hidden, hidden)
    w4, b4 = init_linear(keys[3], hidden, hidden)
    w5, b5 = init_linear(keys[4], hidden, n_var)
    return dict(w1=w1, b1=b1, w2=w2, b2=b2, w3=w3, b3=b3,
                w4=w4, b4=b4, w5=w5, b5=b5)


def reference_forward(pref, params, lbound=None, ubound=None):
    """Pure-JAX f32 reference for correctness checking."""
    h = jnp.maximum(pref @ params["w1"] + params["b1"], 0.0)
    h = jnp.maximum(h @ params["w2"] + params["b2"], 0.0)
    h = jnp.maximum(h @ params["w3"] + params["b3"], 0.0)
    h = jnp.maximum(h @ params["w4"] + params["b4"], 0.0)
    z = h @ params["w5"] + params["b5"]
    if lbound is None:
        return z
    mid = jax.nn.sigmoid(z)
    return mid * (ubound - lbound)[None, :] + lbound[None, :]


if __name__ == "__main__":
    # Small synthetic "problem": n_obj objectives, n_var decision vars, box bounds.
    # batch=200 with tb=128 exercises >1 grid step plus batch-tail padding.
    n_obj, n_var, batch = 3, 10, 200

    key = jax.random.PRNGKey(0)
    k_params, k_pref = jax.random.split(key)

    params = init_params(k_params, n_obj, n_var)

    # Preference vectors on the simplex (typical PSL input), shape (B, n_obj).
    raw = jax.random.uniform(k_pref, (batch, n_obj), jnp.float32, 1e-3, 1.0)
    pref = raw / jnp.sum(raw, axis=1, keepdims=True)

    lbound = jnp.zeros((n_var,), jnp.float32)
    ubound = jnp.ones((n_var,), jnp.float32) * 2.0

    # Bounded branch (sigmoid + rescale).
    out_b = simple_psl_forward(pref, params, lbound, ubound, tb=128)
    out_b = jax.block_until_ready(out_b)
    ref_b = reference_forward(pref, params, lbound, ubound)
    assert out_b.shape == (batch, n_var)
    # bf16 matmul inputs (f32 accumulation) -> relaxed tolerance vs f32 reference.
    assert jnp.allclose(out_b, ref_b, atol=3e-2, rtol=3e-2), "bounded branch mismatch"

    # Unbounded branch (raw MLP, no sigmoid / rescale).
    out_u = simple_psl_forward(pref, params, tb=128)
    out_u = jax.block_until_ready(out_u)
    ref_u = reference_forward(pref, params)
    assert out_u.shape == (batch, n_var)
    assert jnp.allclose(out_u, ref_u, atol=3e-2, rtol=3e-2), "unbounded branch mismatch"

    print("KERNEL_OK")
</pallas_src>

<mosaic_0001>
module attributes {stable_mosaic.version = 11 : i64} {
  func.func @psl_mlp_kernel(%arg0: i32, %arg1: memref<128x128xbf16, #tpu.memory_space<vmem>>, %arg2: memref<128x256xbf16, #tpu.memory_space<vmem>>, %arg3: memref<1x256xf32, #tpu.memory_space<vmem>>, %arg4: memref<256x256xbf16, #tpu.memory_space<vmem>>, %arg5: memref<1x256xf32, #tpu.memory_space<vmem>>, %arg6: memref<256x256xbf16, #tpu.memory_space<vmem>>, %arg7: memref<1x256xf32, #tpu.memory_space<vmem>>, %arg8: memref<256x256xbf16, #tpu.memory_space<vmem>>, %arg9: memref<1x256xf32, #tpu.memory_space<vmem>>, %arg10: memref<256x128xbf16, #tpu.memory_space<vmem>>, %arg11: memref<1x128xf32, #tpu.memory_space<vmem>>, %arg12: memref<1x128xf32, #tpu.memory_space<vmem>>, %arg13: memref<1x128xf32, #tpu.memory_space<vmem>>, %arg14: memref<128x128xf32, #tpu.memory_space<vmem>>) attributes {dimension_semantics = [#tpu.dimension_semantics<parallel>], iteration_bounds = array<i64: 2>, scalar_prefetch = 0 : i64, scratch_operands = 0 : i64, tpu.core_type = #tpu.core_type<tc>, window_params = [{transform_indices = @transform_0, window_bounds = array<i64: 128, 128>}, {pipeline_mode = #tpu.pipeline_mode<synchronous>, transform_indices = @transform_1, window_bounds = array<i64: 128, 256>}, {pipeline_mode = #tpu.pipeline_mode<synchronous>, transform_indices = @transform_2, window_bounds = array<i64: 1, 256>}, {pipeline_mode = #tpu.pipeline_mode<synchronous>, transform_indices = @transform_3, window_bounds = array<i64: 256, 256>}, {pipeline_mode = #tpu.pipeline_mode<synchronous>, transform_indices = @transform_4, window_bounds = array<i64: 1, 256>}, {pipeline_mode = #tpu.pipeline_mode<synchronous>, transform_indices = @transform_5, window_bounds = array<i64: 256, 256>}, {pipeline_mode = #tpu.pipeline_mode<synchronous>, transform_indices = @transform_6, window_bounds = array<i64: 1, 256>}, {pipeline_mode = #tpu.pipeline_mode<synchronous>, transform_indices = @transform_7, window_bounds = array<i64: 256, 256>}, {pipeline_mode = #tpu.pipeline_mode<synchronous>, transform_indices = @transform_8, window_bounds = array<i64: 1, 256>}, {pipeline_mode = #tpu.pipeline_mode<synchronous>, transform_indices = @transform_9, window_bounds = array<i64: 256, 128>}, {pipeline_mode = #tpu.pipeline_mode<synchronous>, transform_indices = @transform_10, window_bounds = array<i64: 1, 128>}, {pipeline_mode = #tpu.pipeline_mode<synchronous>, transform_indices = @transform_11, window_bounds = array<i64: 1, 128>}, {pipeline_mode = #tpu.pipeline_mode<synchronous>, transform_indices = @transform_12, window_bounds = array<i64: 1, 128>}, {transform_indices = @transform_13, window_bounds = array<i64: 128, 128>}]} {
    %c0 = arith.constant 0 : index
    %c0_0 = arith.constant 0 : index
    %0 = vector.load %arg1[%c0, %c0_0] : memref<128x128xbf16, #tpu.memory_space<vmem>>, vector<128x128xbf16>
    %c0_1 = arith.constant 0 : index
    %c0_2 = arith.constant 0 : index
    %1 = vector.load %arg2[%c0_1, %c0_2] : memref<128x256xbf16, #tpu.memory_space<vmem>>, vector<128x256xbf16>
    %cst = arith.constant dense<0.000000e+00> : vector<128x256xf32>
    %2 = tpu.matmul %0, %1, %cst {dimension_numbers = #tpu.dot_dimension_numbers<[1], [0], [0], [1], [0, 0, 1, 1], [], []>} : vector<128x128xbf16>, vector<128x256xbf16>, vector<128x256xf32> -> vector<128x256xf32>
    %c0_3 = arith.constant 0 : index
    %c0_4 = arith.constant 0 : index
    %3 = vector.load %arg3[%c0_3, %c0_4] : memref<1x256xf32, #tpu.memory_space<vmem>>, vector<1x256xf32>
    %4 = vector.broadcast %3 : vector<1x256xf32> to vector<128x256xf32>
    %5 = arith.addf %2, %4 : vector<128x256xf32>
    %cst_5 = arith.constant 0.000000e+00 : f32
    %6 = vector.broadcast %cst_5 : f32 to vector<128x256xf32>
    %7 = arith.maximumf %5, %6 : vector<128x256xf32>
    %8 = arith.truncf %7 : vector<128x256xf32> to vector<128x256xbf16>
    %c0_6 = arith.constant 0 : index
    %c0_7 = arith.constant 0 : index
    %9 = vector.load %arg4[%c0_6, %c0_7] : memref<256x256xbf16, #tpu.memory_space<vmem>>, vector<256x256xbf16>
    %cst_8 = arith.constant dense<0.000000e+00> : vector<128x256xf32>
    %10 = tpu.matmul %8, %9, %cst_8 {dimension_numbers = #tpu.dot_dimension_numbers<[1], [0], [0], [1], [0, 0, 1, 1], [], []>} : vector<128x256xbf16>, vector<256x256xbf16>, vector<128x256xf32> -> vector<128x256xf32>
    %c0_9 = arith.constant 0 : index
    %c0_10 = arith.constant 0 : index
    %11 = vector.load %arg5[%c0_9, %c0_10] : memref<1x256xf32, #tpu.memory_space<vmem>>, vector<1x256xf32>
    %12 = vector.broadcast %11 : vector<1x256xf32> to vector<128x256xf32>
    %13 = arith.addf %10, %12 : vector<128x256xf32>
    %cst_11 = arith.constant 0.000000e+00 : f32
    %14 = vector.broadcast %cst_11 : f32 to vector<128x256xf32>
    %15 = arith.maximumf %13, %14 : vector<128x256xf32>
    %16 = arith.truncf %15 : vector<128x256xf32> to vector<128x256xbf16>
    %c0_12 = arith.constant 0 : index
    %c0_13 = arith.constant 0 : index
    %17 = vector.load %arg6[%c0_12, %c0_13] : memref<256x256xbf16, #tpu.memory_space<vmem>>, vector<256x256xbf16>
    %cst_14 = arith.constant dense<0.000000e+00> : vector<128x256xf32>
    %18 = tpu.matmul %16, %17, %cst_14 {dimension_numbers = #tpu.dot_dimension_numbers<[1], [0], [0], [1], [0, 0, 1, 1], [], []>} : vector<128x256xbf16>, vector<256x256xbf16>, vector<128x256xf32> -> vector<128x256xf32>
    %c0_15 = arith.constant 0 : index
    %c0_16 = arith.constant 0 : index
    %19 = vector.load %arg7[%c0_15, %c0_16] : memref<1x256xf32, #tpu.memory_space<vmem>>, vector<1x256xf32>
    %20 = vector.broadcast %19 : vector<1x256xf32> to vector<128x256xf32>
    %21 = arith.addf %18, %20 : vector<128x256xf32>
    %cst_17 = arith.constant 0.000000e+00 : f32
    %22 = vector.broadcast %cst_17 : f32 to vector<128x256xf32>
    %23 = arith.maximumf %21, %22 : vector<128x256xf32>
    %24 = arith.truncf %23 : vector<128x256xf32> to vector<128x256xbf16>
    %c0_18 = arith.constant 0 : index
    %c0_19 = arith.constant 0 : index
    %25 = vector.load %arg8[%c0_18, %c0_19] : memref<256x256xbf16, #tpu.memory_space<vmem>>, vector<256x256xbf16>
    %cst_20 = arith.constant dense<0.000000e+00> : vector<128x256xf32>
    %26 = tpu.matmul %24, %25, %cst_20 {dimension_numbers = #tpu.dot_dimension_numbers<[1], [0], [0], [1], [0, 0, 1, 1], [], []>} : vector<128x256xbf16>, vector<256x256xbf16>, vector<128x256xf32> -> vector<128x256xf32>
    %c0_21 = arith.constant 0 : index
    %c0_22 = arith.constant 0 : index
    %27 = vector.load %arg9[%c0_21, %c0_22] : memref<1x256xf32, #tpu.memory_space<vmem>>, vector<1x256xf32>
    %28 = vector.broadcast %27 : vector<1x256xf32> to vector<128x256xf32>
    %29 = arith.addf %26, %28 : vector<128x256xf32>
    %cst_23 = arith.constant 0.000000e+00 : f32
    %30 = vector.broadcast %cst_23 : f32 to vector<128x256xf32>
    %31 = arith.maximumf %29, %30 : vector<128x256xf32>
    %32 = arith.truncf %31 : vector<128x256xf32> to vector<128x256xbf16>
    %c0_24 = arith.constant 0 : index
    %c0_25 = arith.constant 0 : index
    %33 = vector.load %arg10[%c0_24, %c0_25] : memref<256x128xbf16, #tpu.memory_space<vmem>>, vector<256x128xbf16>
    %cst_26 = arith.constant dense<0.000000e+00> : vector<128x128xf32>
    %34 = tpu.matmul %32, %33, %cst_26 {dimension_numbers = #tpu.dot_dimension_numbers<[1], [0], [0], [1], [0, 0, 1, 1], [], []>} : vector<128x256xbf16>, vector<256x128xbf16>, vector<128x128xf32> -> vector<128x128xf32>
    %c0_27 = arith.constant 0 : index
    %c0_28 = arith.constant 0 : index
    %35 = vector.load %arg11[%c0_27, %c0_28] : memref<1x128xf32, #tpu.memory_space<vmem>>, vector<1x128xf32>
    %36 = vector.broadcast %35 : vector<1x128xf32> to vector<128x128xf32>
    %37 = arith.addf %34, %36 : vector<128x128xf32>
    %cst_29 = arith.constant 0.000000e+00 : f32
    %38 = vector.broadcast %cst_29 : f32 to vector<128x128xf32>
    %39 = arith.subf %38, %37 : vector<128x128xf32>
    %40 = math.exp %39 : vector<128x128xf32>
    %cst_30 = arith.constant 1.000000e+00 : f32
    %41 = vector.broadcast %cst_30 : f32 to vector<128x128xf32>
    %42 = arith.addf %41, %40 : vector<128x128xf32>
    %43 = tpu.reciprocal %42 {approx = true} : vector<128x128xf32> -> vector<128x128xf32>
    %c0_31 = arith.constant 0 : index
    %c0_32 = arith.constant 0 : index
    %44 = vector.load %arg12[%c0_31, %c0_32] : memref<1x128xf32, #tpu.memory_space<vmem>>, vector<1x128xf32>
    %45 = vector.broadcast %44 : vector<1x128xf32> to vector<128x128xf32>
    %46 = arith.mulf %43, %45 : vector<128x128xf32>
    %c0_33 = arith.constant 0 : index
    %c0_34 = arith.constant 0 : index
    %47 = vector.load %arg13[%c0_33, %c0_34] : memref<1x128xf32, #tpu.memory_space<vmem>>, vector<1x128xf32>
    %48 = vector.broadcast %47 : vector<1x128xf32> to vector<128x128xf32>
    %49 = arith.addf %46, %48 : vector<128x128xf32>
    %c0_35 = arith.constant 0 : index
    %c0_36 = arith.constant 0 : index
    %50 = vector.load %arg14[%c0_35, %c0_36] : memref<128x128xf32, #tpu.memory_space<vmem>>, vector<128x128xf32>
    tpu.vector_store %arg14[%c0_35, %c0_36], %49 {strides = array<i32>} : memref<128x128xf32, #tpu.memory_space<vmem>>, vector<128x128xf32>,
    return
  }
  func.func @transform_0(%arg0: i32) -> (i32, i32) {
    %c0_i32 = arith.constant 0 : i32
    %c0_i32_0 = arith.constant 0 : i32
    return %arg0, %c0_i32 : i32, i32
  }
  func.func @transform_1(%arg0: i32) -> (i32, i32) {
    %c0_i32 = arith.constant 0 : i32
    %c0_i32_0 = arith.constant 0 : i32
    %c0_i32_1 = arith.constant 0 : i32
    return %c0_i32, %c0_i32_0 : i32, i32
  }
  func.func @transform_2(%arg0: i32) -> (i32, i32) {
    %c0_i32 = arith.constant 0 : i32
    %c0_i32_0 = arith.constant 0 : i32
    %c0_i32_1 = arith.constant 0 : i32
    return %c0_i32, %c0_i32_0 : i32, i32
  }
  func.func @transform_3(%arg0: i32) -> (i32, i32) {
    %c0_i32 = arith.constant 0 : i32
    %c0_i32_0 = arith.constant 0 : i32
    %c0_i32_1 = arith.constant 0 : i32
    return %c0_i32, %c0_i32_0 : i32, i32
  }
  func.func @transform_4(%arg0: i32) -> (i32, i32) {
    %c0_i32 = arith.constant 0 : i32
    %c0_i32_0 = arith.constant 0 : i32
    %c0_i32_1 = arith.constant 0 : i32
    return %c0_i32, %c0_i32_0 : i32, i32
  }
  func.func @transform_5(%arg0: i32) -> (i32, i32) {
    %c0_i32 = arith.constant 0 : i32
    %c0_i32_0 = arith.constant 0 : i32
    %c0_i32_1 = arith.constant 0 : i32
    return %c0_i32, %c0_i32_0 : i32, i32
  }
  func.func @transform_6(%arg0: i32) -> (i32, i32) {
    %c0_i32 = arith.constant 0 : i32
    %c0_i32_0 = arith.constant 0 : i32
    %c0_i32_1 = arith.constant 0 : i32
    return %c0_i32, %c0_i32_0 : i32, i32
  }
  func.func @transform_7(%arg0: i32) -> (i32, i32) {
    %c0_i32 = arith.constant 0 : i32
    %c0_i32_0 = arith.constant 0 : i32
    %c0_i32_1 = arith.constant 0 : i32
    return %c0_i32, %c0_i32_0 : i32, i32
  }
  func.func @transform_8(%arg0: i32) -> (i32, i32) {
    %c0_i32 = arith.constant 0 : i32
    %c0_i32_0 = arith.constant 0 : i32
    %c0_i32_1 = arith.constant 0 : i32
    return %c0_i32, %c0_i32_0 : i32, i32
  }
  func.func @transform_9(%arg0: i32) -> (i32, i32) {
    %c0_i32 = arith.constant 0 : i32
    %c0_i32_0 = arith.constant 0 : i32
    %c0_i32_1 = arith.constant 0 : i32
    return %c0_i32, %c0_i32_0 : i32, i32
  }
  func.func @transform_10(%arg0: i32) -> (i32, i32) {
    %c0_i32 = arith.constant 0 : i32
    %c0_i32_0 = arith.constant 0 : i32
    %c0_i32_1 = arith.constant 0 : i32
    return %c0_i32, %c0_i32_0 : i32, i32
  }
  func.func @transform_11(%arg0: i32) -> (i32, i32) {
    %c0_i32 = arith.constant 0 : i32
    %c0_i32_0 = arith.constant 0 : i32
    %c0_i32_1 = arith.constant 0 : i32
    return %c0_i32, %c0_i32_0 : i32, i32
  }
  func.func @transform_12(%arg0: i32) -> (i32, i32) {
    %c0_i32 = arith.constant 0 : i32
    %c0_i32_0 = arith.constant 0 : i32
    %c0_i32_1 = arith.constant 0 : i32
    return %c0_i32, %c0_i32_0 : i32, i32
  }
  func.func @transform_13(%arg0: i32) -> (i32, i32) {
    %c0_i32 = arith.constant 0 : i32
    %c0_i32_0 = arith.constant 0 : i32
    return %arg0, %c0_i32 : i32, i32
  }
}

</mosaic_0001>

<bundles_post_ra>
// kernel: tpu_custom_call.1
= control target key start
LH: loop header
LB: loop body
LE: loop exit
PB: predicated region body
PF: predicated region fallthrough
CT: control target
= control target key end

     0   :  { %s4015_s0 = inlined_call_operand.hbm [shape: bf16[256,128], index: 0, kind: input, shape index: {}]   ;;  %s4016_s1 = inlined_call_operand.hbm [shape: bf16[128,256], index: 1, kind: input, shape index: {}]   ;;  %s4017_s2 = inlined_call_operand.vmem [shape: f32[1,256], index: 2, kind: input, shape index: {}]   ;;  %s4018_s3 = inlined_call_operand.hbm [shape: bf16[256,256], index: 3, kind: input, shape index: {}]   ;;  %s4019_s4 = inlined_call_operand.vmem [shape: f32[1,256], index: 4, kind: input, shape index: {}]   ;;  %s4020_s5 = inlined_call_operand.hbm [shape: bf16[256,256], index: 5, kind: input, shape index: {}]   ;;  %s4021_s6 = inlined_call_operand.vmem [shape: f32[1,256], index: 6, kind: input, shape index: {}]   ;;  %s4022_s7 = inlined_call_operand.hbm [shape: bf16[256,256], index: 7, kind: input, shape index: {}]   ;;  %s4023_s8 = inlined_call_operand.vmem [shape: f32[1,256], index: 8, kind: input, shape index: {}]   ;;  %s4024_s9 = inlined_call_operand.hbm [shape: bf16[256,128], index: 9, kind: input, shape index: {}]   ;;  %s4025_s10 = inlined_call_operand.vmem [shape: f32[1,128], index: 10, kind: input, shape index: {}]   ;;  %s4026_s11 = inlined_call_operand.vmem [shape: f32[1,128], index: 11, kind: input, shape index: {}]   ;;  %s4027_s12 = inlined_call_operand.vmem [shape: f32[1,128], index: 12, kind: input, shape index: {}]   ;;  %s4028_s13 = inlined_call_operand.hbm [shape: f32[256,128], index: 13, kind: output, shape index: {}]  }
   0x1   :  { %4034 = sst [smem:[#allocation19_spill]] %s4016_s1 }
   0x2   :  { %4035 = sst [smem:[#allocation20_spill]] %s4023_s8 }
   0x3   :  { %4036 = sst [smem:[#allocation21_spill]] %s4025_s10 }
   0x4   :  { %4037 = sst [smem:[#allocation22_spill]] %s4026_s11 }
   0x5   :  { %4038 = sst [smem:[#allocation23_spill]] %s4027_s12 }
   0x6   :  { %4039 = sst [smem:[#allocation24_spill]] %s4028_s13 }
   0x7   :  { %18 = vsyncpa [#allocation3], 0 }
   0x8   :  { %20 = vsyncpa [#allocation3 + $0x1], 0 }
   0x9   :  { %21 = vsyncpa [#allocation6], 0 }
   0xa   :  { %22 = vsyncpa [#allocation9], 0 }
   0xb   :  { %23 = vsyncpa [#allocation12], 0 }
   0xc   :  { %24 = vsyncpa [#allocation4], 0 }
   0xd   :  { %26 = vsyncpa [#allocation4 + $0x1], 0  ;;  %s3411_s25 = smov 0   ;;  %s3413_s26 = smov 0  }
   0xe   :  { %s3415_s27 = smov 0   ;;  %s3417_s28 = smov 0  }
   0xf LB: > { %s3327_s29 = smov [#allocation5]   ;;  %s3432_s14 = sadd.s32 4294967295, %s3325_s28   ;;  %s3325_s28 = sphi %s3417_s28, %s4068_s28   ;;  %s3321_s27 = sphi %s3415_s27, %s4067_s27   ;;  %s3317_s26 = sphi %s3413_s26, %s4066_s26   ;;  %s3313_s25 = sphi %s3411_s25, %s4065_s25  }
  0x10   : > { %s353_s30 = sshll.u32 %s3327_s29, 4  ;;  %p2473_p0 = scmp.ge.s32.totalorder %s3325_s28, 1  ;;  %s3437_s30 = int_to_ptr.vmem [resolvable:$true] %s353_s30 }
  0x11   : > { %p4030_p1 = scmp.eq.s32.totalorder %s3432_s14, 0  ;;  %p341_p2 = scmp.lt.s32.totalorder %s3325_s28, 3 }
  0x12   : > { %s3328_s16 = smov [#allocation8]   ;;  %s3329_s19 = smov [#allocation7]  }
  0x13   : > { %p3439_p3 = pnand %p2473_p0, %p341_p2  ;;  %s385_s17 = sshll.u32 %s3328_s16, 4  ;;  %s3452_s17 = int_to_ptr.vmem [resolvable:$true] %s385_s17 }
  0x14   : > { %s369_s20 = sshll.u32 %s3329_s19, 4  ;;  %s4042_s1 = sld [smem:[#allocation19_spill]]  ;;  %s3454_s20 = int_to_ptr.vmem [resolvable:$true] %s369_s20 }
  0x15   : > { %s4040_s15 = scalar_select %p3439_p3, 1, 0 }
  0x16   : > { %p2741_p5 = pneg %p3439_p3 }
  0x18   : > { %p3448_p6 = pnand %p2741_p5, %p4030_p1 }
  0x1a   : > { %s3077_s23 = scalar_lea.hbm %s4042_s1, 2048  ;;  %p3464_p8 = pneg %p3448_p6 }
  0x1b   : > { %p3078_p7 = scmp.ne.s32.totalorder %s4042_s1, %s3077_s23  ;;  %p3084_p11 = scmp.lt.u32.totalorder %s3077_s23, %s4042_s1 }
  0x1d   : > { %p3080_p9 = pnand %p3464_p8, %p3078_p7 }
  0x1f   : > { %p3081_p10 = pneg %p3080_p9 }
  0x21   : > { %p3086_p12 = pnand %p3084_p11, %p3081_p10 }
  0x23   : > { %3089 = shalt.err (!%p3086_p12)
}
  0x24   : > { %s3090_s21 = scalar_lea.vmem %s3437_s30, 2048  ;;  %p3098_p5 = scmp.lt.s32.totalorder %s3437_s30, %s3437_s30 }
  0x25   : > { %p3091_p13 = scmp.ne.s32.totalorder %s3437_s30, %s3090_s21  ;;  %p3099_p4 = scmp.lt.s32.totalorder %s3090_s21, %s3090_s21 }
  0x27   : > { %p3093_p0 = pnand %p3091_p13, %p3464_p8  ;;  %p3100_p7 = por %p3099_p4, %p3098_p5 }
  0x29   : > { %p3094_p2 = pneg %p3093_p0 }
  0x2b   : > { %p3101_p9 = pnand %p3100_p7, %p3094_p2 }
  0x2d   : > { %3104 = shalt.err (!%p3101_p9)
}
  0x2e   : > { %s3330_s22 = smov 128   ;;  %s3331_s13 = smov 8  }
  0x2f   : > { %2744 = dma.hbm_to_vmem [thread:$0]  (!%p3448_p6), %s4042_s1, 2048, %s3437_s30, [#allocation6], %s3330_s22, %s3330_s22, %s3331_s13  }
  0x30   : > { %s3105_s21 = scalar_lea.hbm %s4020_s5, 4096 }
  0x31   : > { %p3106_p4 = scmp.ne.s32.totalorder %s4020_s5, %s3105_s21  ;;  %p3112_p12 = scmp.lt.u32.totalorder %s3105_s21, %s4020_s5 }
  0x33   : > { %p3108_p10 = pnand %p3106_p4, %p3464_p8 }
  0x35   : > { %p3109_p11 = pneg %p3108_p10 }
  0x37   : > { %p3114_p13 = pnand %p3112_p12, %p3109_p11 }
  0x39   : > { %3117 = shalt.err (!%p3114_p13)
}
  0x3a   : > { %s3118_s30 = scalar_lea.vmem %s3452_s17, 4096  ;;  %p3126_p7 = scmp.lt.s32.totalorder %s3452_s17, %s3452_s17 }
  0x3b   : > { %p3119_p0 = scmp.ne.s32.totalorder %s3452_s17, %s3118_s30  ;;  %p3127_p9 = scmp.lt.s32.totalorder %s3118_s30, %s3118_s30 }
  0x3d   : > { %p3121_p2 = pnand %p3119_p0, %p3464_p8  ;;  %p3128_p4 = por %p3127_p9, %p3126_p7 }
  0x3f   : > { %p3122_p5 = pneg %p3121_p2 }
  0x41   : > { %p3129_p10 = pnand %p3128_p4, %p3122_p5 }
  0x43   : > { %3132 = shalt.err (!%p3129_p10)
}
  0x44   : > { %2750 = dma.hbm_to_vmem [thread:$0]  (!%p3448_p6), %s4020_s5, 4096, %s3452_s17, [#allocation9], %s3330_s22, %s3330_s22, %s3331_s13  }
  0x45   : > { %s3133_s23 = scalar_lea.hbm %s4018_s3, 4096 }
  0x46   : > { %p3134_p11 = scmp.ne.s32.totalorder %s4018_s3, %s3133_s23  ;;  %p3140_p0 = scmp.lt.u32.totalorder %s3133_s23, %s4018_s3 }
  0x48   : > { %p3136_p12 = pnand %p3134_p11, %p3464_p8 }
  0x4a   : > { %p3137_p13 = pneg %p3136_p12 }
  0x4c   : > { %p3142_p2 = pnand %p3140_p0, %p3137_p13 }
  0x4e   : > { %3145 = shalt.err (!%p3142_p2)
}
  0x4f   : > { %s3146_s17 = scalar_lea.vmem %s3454_s20, 4096  ;;  %p3154_p4 = scmp.lt.s32.totalorder %s3454_s20, %s3454_s20 }
  0x50   : > { %p3147_p5 = scmp.ne.s32.totalorder %s3454_s20, %s3146_s17  ;;  %p3155_p10 = scmp.lt.s32.totalorder %s3146_s17, %s3146_s17 }
  0x52   : > { %p3149_p7 = pnand %p3147_p5, %p3464_p8  ;;  %p3156_p11 = por %p3155_p10, %p3154_p4 }
  0x54   : > { %p3150_p9 = pneg %p3149_p7 }
  0x56   : > { %p3157_p12 = pnand %p3156_p11, %p3150_p9 }
  0x58   : > { %3160 = shalt.err (!%p3157_p12)
}
  0x59   : > { %2747 = dma.hbm_to_vmem [thread:$0]  (!%p3448_p6), %s4018_s3, 4096, %s3454_s20, [#allocation6], %s3330_s22, %s3330_s22, %s3331_s13  }
  0x5a   : > { %s3332_s10 = smov [#allocation10]   ;;  %s3333_s12 = smov [#allocation11]  }
  0x5b   : > { %s401_s11 = sshll.u32 %s3332_s10, 4  ;;  %s417_s23 = sshll.u32 %s3333_s12, 4  ;;  %s402_s11 = int_to_ptr.vmem [resolvable:$true] %s401_s11  ;;  %s418_s23 = int_to_ptr.vmem [resolvable:$true] %s417_s23 }
  0x5c   : > { %s3161_s19 = scalar_lea.hbm %s4022_s7, 4096 }
  0x5d   : > { %p3162_p13 = scmp.ne.s32.totalorder %s4022_s7, %s3161_s19  ;;  %p3168_p5 = scmp.lt.u32.totalorder %s3161_s19, %s4022_s7 }
  0x5f   : > { %p3164_p0 = pnand %p3162_p13, %p3464_p8 }
  0x61   : > { %p3165_p2 = pneg %p3164_p0 }
  0x63   : > { %p3170_p7 = pnand %p3168_p5, %p3165_p2 }
  0x65   : > { %3173 = shalt.err (!%p3170_p7)
}
  0x66   : > { %s3174_s20 = scalar_lea.vmem %s402_s11, 4096  ;;  %p3182_p11 = scmp.lt.s32.totalorder %s402_s11, %s402_s11 }
  0x67   : > { %p3175_p9 = scmp.ne.s32.totalorder %s402_s11, %s3174_s20  ;;  %p3183_p12 = scmp.lt.s32.totalorder %s3174_s20, %s3174_s20 }
  0x69   : > { %p3177_p4 = pnand %p3175_p9, %p3464_p8  ;;  %p3184_p1 = por %p3183_p12, %p3182_p11 }
  0x6b   : > { %p3178_p10 = pneg %p3177_p4 }
  0x6d   : > { %p3185_p3 = pnand %p3184_p1, %p3178_p10 }
  0x6f   : > { %3188 = shalt.err (!%p3185_p3)
}
  0x70   : > { %2753 = dma.hbm_to_vmem [thread:$0]  (!%p3448_p6), %s4022_s7, 4096, %s402_s11, [#allocation9], %s3330_s22, %s3330_s22, %s3331_s13  }
  0x71   : > { %s3189_s24 = scalar_lea.hbm %s4024_s9, 2048 }
  0x72   : > { %p3190_p1 = scmp.ne.s32.totalorder %s4024_s9, %s3189_s24  ;;  %p3196_p0 = scmp.lt.u32.totalorder %s3189_s24, %s4024_s9 }
  0x74   : > { %p3192_p3 = pnand %p3190_p1, %p3464_p8 }
  0x76   : > { %p3193_p13 = pneg %p3192_p3 }
  0x78   : > { %p3198_p2 = pnand %p3196_p0, %p3193_p13 }
  0x7a   : > { %3201 = shalt.err (!%p3198_p2)
}
  0x7b   : > { %s3202_s30 = scalar_lea.vmem %s418_s23, 2048  ;;  %p3210_p4 = scmp.lt.s32.totalorder %s418_s23, %s418_s23 }
  0x7c   : > { %p3203_p5 = scmp.ne.s32.totalorder %s418_s23, %s3202_s30  ;;  %p3211_p10 = scmp.lt.s32.totalorder %s3202_s30, %s3202_s30 }
  0x7e   : > { %p3205_p7 = pnand %p3203_p5, %p3464_p8  ;;  %p3212_p11 = por %p3211_p10, %p3210_p4 }
  0x80   : > { %p3206_p9 = pneg %p3205_p7 }
  0x82   : > { %p3213_p12 = pnand %p3212_p11, %p3206_p9 }
  0x84   : > { %3216 = shalt.err (!%p3213_p12)
}
  0x85   : > { %s4032_s22 = smov 64   ;;  %s3335_s16 = smov 4  }
  0x86   : > { %2756 = dma.hbm_to_vmem [thread:$0]  (!%p3448_p6), %s4024_s9, 2048, %s418_s23, [#allocation12], %s4032_s22, %s4032_s22, %s3335_s16  }
  0x87   : > { %s2472_s20 = sadd.s32 4294967294, %s3325_s28   ;;  %s3584_s1 = sadd.s32 1, %s3325_s28  }
  0x88   : > { %s39_s8 = sadd.s32 1, %s3321_s27  ;;  %s36_s10 = ssub.s32 %s3325_s28, %s3584_s1 }
  0x89   : > { %p46_p8 = scmp.ne.s32.totalorder %s3321_s27, %s3317_s26  ;;  %p37_p1 = scmp.eq.s32.totalorder %s36_s10, 0 }
  0x8a   : > { %p47_p3 = scmp.eq.s32.totalorder %s3325_s28, 0  ;;  %p52_p13 = scmp.ne.s32.totalorder %s3317_s26, %s3313_s25 }
  0x8b   : > { %p328_p0 = scmp.eq.s32.totalorder %s3432_s14, 1  ;;  %p4044_p5 = scmp.eq.s32.totalorder %s3432_s14, 0 }
  0x8c   : > { %s3596_s18 = scalar_select %p37_p1, %s3321_s27, %s39_s8  }
  0x8d   : > { %p48_p2 = por %p47_p3, %p46_p8  ;;  %p3600_p7 = por %p4044_p5, %p52_p13 }
  0x8e   : > { %p3604_p6 = por %p328_p0, %p46_p8  ;;  %p334_p9 = scmp.eq.s32.totalorder %s2472_s20, 1 }
  0x8f   : > { %p2770_p4 = scmp.lt.s32.totalorder %s3325_s28, 2  ;;  %s440_s24 = sand.u32 1, %s3321_s27  }
  0x90   : > { %s4046_s23 = scalar_select %p3604_p6, 1, 0 }
  0x91   : > { %p3610_p10 = por %p334_p9, %p52_p13  ;;  %s2480_s19 = sshll.u32 %s440_s24, 6 }
  0x92   : > { %s2635_s21 = sshll.u32 %s3325_s28, 10  ;;  %s444_s11 = scalar_lea.vmem [#allocation2], %s2480_s19 }
  0x93   : > { %s4047_s29 = scalar_select %p3610_p10, 1, 0 }
  0x94   : > { %s3618_s13 = scalar_lea.hbm %s4015_s0, %s2635_s21  ;;  %s451_s8 = sshll.u32 %s444_s11, 4  ;;  %s3624_s8 = int_to_ptr.vmem [resolvable:$true] %s451_s8 }
  0x95   : > { %p3620_p11 = pnand %p2770_p4, %p48_p2  ;;  %s3626_s10 = scalar_lea.sflag [#allocation3], %s440_s24 }
  0x96   : > { %s3217_s22 = scalar_lea.hbm %s3618_s13, 1024  ;;  %s3222_s17 = scalar_lea.hbm %s4015_s0, 2048 }
  0x97   : > { %p3218_p12 = scmp.ne.s32.totalorder %s3618_s13, %s3217_s22  ;;  %p3219_p8 = pneg %p3620_p11 }
  0x98   : > { %p3223_p13 = scmp.lt.u32.totalorder %s3618_s13, %s4015_s0  ;;  %p3224_p0 = scmp.lt.u32.totalorder %s3222_s17, %s3217_s22 }
  0x99   : > { %p3220_p1 = pnand %p3219_p8, %p3218_p12  ;;  %p3226_p5 = scmp.lt.u32.totalorder %s3217_s22, %s3618_s13 }
  0x9a   : > { %p3225_p2 = por %p3224_p0, %p3223_p13 }
  0x9b   : > { %p3221_p3 = pneg %p3220_p1 }
  0x9c   : > { %p3227_p9 = por %p3226_p5, %p3225_p2 }
  0x9e   : > { %p3228_p4 = pnand %p3227_p9, %p3221_p3 }
  0xa0   : > { %3231 = shalt.err (!%p3228_p4)
}
  0xa1   : > { %s3232_s24 = scalar_lea.vmem %s3624_s8, 1024  ;;  %s3336_s19 = smov [#allocation2]  }
  0xa2   : > { %p3233_p12 = scmp.ne.s32.totalorder %s3624_s8, %s3232_s24  ;;  %s3237_s21 = sshll.u32 %s3336_s19, 4  ;;  %s3238_s21 = int_to_ptr.vmem [resolvable:$false] %s3237_s21 }
  0xa3   : > { %s3239_s30 = scalar_lea.vmem %s3238_s21, 2048  ;;  %p3240_p6 = scmp.lt.s32.totalorder %s3624_s8, %s3238_s21 }
  0xa4   : > { %p3235_p1 = pnand %p3233_p12, %p3219_p8  ;;  %p3241_p13 = scmp.lt.s32.totalorder %s3239_s30, %s3232_s24 }
  0xa6   : > { %p3236_p10 = pneg %p3235_p1  ;;  %p3242_p0 = por %p3241_p13, %p3240_p6 }
  0xa8   : > { %p3243_p2 = pnand %p3242_p0, %p3236_p10 }
  0xaa   : > { %3246 = shalt.err (!%p3243_p2)
}
  0xab   : > { %s4049_s22 = smov 64   ;;  %p4050_p8 = scmp.ne.s32.totalorder %s4040_s15, 0 }
  0xac   : > { %2760 = dma.hbm_to_vmem [thread:$0]  (!%p3620_p11), %s3618_s13, 1024, %s3624_s8, %s3626_s10, %s4049_s22, %s4049_s22, %s3335_s16  }
  0xad   : > { %463 = sbr.rel (%p4050_p8) target bundleno = 1434 (0x59a), region = 72  ;;  %s3660_s17 = sand.u32 (!%p4050_p8), 1, %s3317_s26  }
  0xae   : > { %s2484_s11 = sshll.u32 (!%p4050_p8), %s3660_s17, 6  ;;  %s466_s24 = scalar_lea.sflag (!%p4050_p8), [#allocation3], %s3660_s17 }
  0xaf   : > { %s3664_s19 = scalar_lea.vmem (!%p4050_p8), [#allocation2], %s2484_s11 }
  0xb4   : > { %3292 = dma.done.wait (%p3600_p7), %s466_s24, 1024  }
  0xb5   : > { %3294 = vsyncadd (%p3600_p7), %s466_s24, 4294966272  ;;  %p4051_p6 = scmp.eq.s32.totalorder %s3432_s14, 0 }
  0xb7   : > { %3296 = dma.done.wait (%p4051_p6), [#allocation6], 6144   ;;  %p4052_p10 = pmov %p4051_p6 }
  0xb8   : > { %p4053_p11 = pmov %p4051_p6 }
  0xb9   : > { %3298 = vsyncadd (%p4052_p10), [#allocation6], 4294961152 }
  0xba   : > { %3300 = dma.done.wait (%p4053_p11), [#allocation9], 8192   ;;  %p4054_p3 = pmov %p4051_p6 }
  0xbc   : > { %3302 = vsyncadd (%p4054_p3), [#allocation9], 4294959104  ;;  %p4055_p5 = pmov %p4054_p3 }
  0xbd   : > { %p4056_p9 = pmov %p4054_p3 }
  0xbe   : > { %3304 = dma.done.wait (%p4055_p5), [#allocation12], 2048  }
  0xbf   : > { %3306 = vsyncadd (%p4056_p9), [#allocation12], 4294965248  ;;  %v3337_v0 = vmov 0   ;;  %v2821_v1 = vld [vmem:[#allocation5 + $0x4] ss:$8 sps:$4 sm:$0xff]   ;;  %v2847_v34 = vld [vmem:[%s3664_s19 + $0x10] sm:$0xff]  }
  0xc0   : > { %739 = vmatprep.mubr.bf16.mxu0 %v3337_v0  ;;  %v2823_v2 = vld [vmem:[#allocation5] ss:$8 sps:$4 sm:$0xff]   ;;  %707 = vmatprep.subr.bf16.mxu0 %v2821_v1  ;;  %v2824_v3 = vld [vmem:[#allocation5 + $0x14] ss:$8 sps:$4 sm:$0xff]   ;;  %v2826_v4 = vld [vmem:[#allocation5 + $0x10] ss:$8 sps:$4 sm:$0xff]  }
  0xc1   : > { %708 = vmatpush1.bf16.msra.mxu0 %v2823_v2  ;;  %v2827_v5 = vld [vmem:[#allocation5 + $0x24] ss:$8 sps:$4 sm:$0xff]   ;;  %v2829_v6 = vld [vmem:[#allocation5 + $0x20] ss:$8 sps:$4 sm:$0xff]   ;;  %v2830_v7 = vld [vmem:[#allocation5 + $0x34] ss:$8 sps:$4 sm:$0xff]  }
  0xc2   : > { %709 = vmatprep.subr.bf16.mxu0 %v2824_v3  ;;  %v2832_v8 = vld [vmem:[#allocation5 + $0x30] ss:$8 sps:$4 sm:$0xff]   ;;  %v2833_v9 = vld [vmem:[#allocation5 + $0x44] ss:$8 sps:$4 sm:$0xff]   ;;  %v2835_v10 = vld [vmem:[#allocation5 + $0x40] ss:$8 sps:$4 sm:$0xff]  }
  0xc3   : > { %v2836_v11 = vld [vmem:[#allocation5 + $0x54] ss:$8 sps:$4 sm:$0xff]   ;;  %v2838_v12 = vld [vmem:[#allocation5 + $0x50] ss:$8 sps:$4 sm:$0xff]   ;;  %v2839_v13 = vld [vmem:[#allocation5 + $0x64] ss:$8 sps:$4 sm:$0xff]  }
  0xc4   : > { %v2853_v14 = vld [vmem:[#allocation7 + $0x4] ss:$8 sps:$4 sm:$0xff]   ;;  %v2855_v15 = vld [vmem:[#allocation7] ss:$8 sps:$4 sm:$0xff]   ;;  %v2856_v16 = vld [vmem:[#allocation7 + $0x14] ss:$8 sps:$4 sm:$0xff]  }
  0xc5   : > { %710 = vmatpush1.bf16.msra.mxu0 %v2826_v4  ;;  %1072 = vmatprep.subr.bf16.mxu1 %v2853_v14  ;;  %v2858_v17 = vld [vmem:[#allocation7 + $0x10] ss:$8 sps:$4 sm:$0xff]   ;;  %v2841_v18 = vld [vmem:[#allocation5 + $0x60] ss:$8 sps:$4 sm:$0xff]   ;;  %v2859_v19 = vld [vmem:[#allocation7 + $0x24] ss:$8 sps:$4 sm:$0xff]  }
  0xc6   : > { %711 = vmatprep.subr.bf16.mxu0 %v2827_v5  ;;  %1073 = vmatpush1.bf16.msra.mxu1 %v2855_v15  ;;  %v2842_v20 = vld [vmem:[#allocation5 + $0x74] ss:$8 sps:$4 sm:$0xff]   ;;  %v2861_v21 = vld [vmem:[#allocation7 + $0x20] ss:$8 sps:$4 sm:$0xff]   ;;  %v2844_v22 = vld [vmem:[#allocation5 + $0x70] ss:$8 sps:$4 sm:$0xff]  }
  0xc7   : > { %1074 = vmatprep.subr.bf16.mxu1 %v2856_v16  ;;  %v2862_v23 = vld [vmem:[#allocation7 + $0x34] ss:$8 sps:$4 sm:$0xff]   ;;  %v2845_v24 = vld [vmem:[%s3664_s19] sm:$0xff]   ;;  %v2864_v25 = vld [vmem:[#allocation7 + $0x30] ss:$8 sps:$4 sm:$0xff]   ;;  %s4057_s30 = sld [smem:[#allocation20_spill]] }
  0xc8   : > { %v2865_v26 = vld [vmem:[#allocation7 + $0x44] ss:$8 sps:$4 sm:$0xff]   ;;  %v2867_v27 = vld [vmem:[#allocation7 + $0x40] ss:$8 sps:$4 sm:$0xff]   ;;  %v2868_v28 = vld [vmem:[#allocation7 + $0x54] ss:$8 sps:$4 sm:$0xff]  }
  0xc9   : > { %712 = vmatpush1.bf16.msra.mxu0 %v2829_v6  ;;  %v2846_v29 = vld [vmem:[%s3664_s19 + $0x8] sm:$0xff]   ;;  %v2870_v30 = vld [vmem:[#allocation7 + $0x50] ss:$8 sps:$4 sm:$0xff]   ;;  %v2874_v33 = vld [vmem:[#allocation7 + $0x74] ss:$8 sps:$4 sm:$0xff]   ;;  %s4058_s24 = sld [smem:[#allocation21_spill]] }
  0xca   : > { %713 = vmatprep.subr.bf16.mxu0 %v2830_v7  ;;  %1075 = vmatpush1.bf16.msra.mxu1 %v2858_v17  ;;  %v2871_v31 = vld [vmem:[#allocation7 + $0x64] ss:$8 sps:$4 sm:$0xff]   ;;  %v2873_v32 = vld [vmem:[#allocation7 + $0x60] ss:$8 sps:$4 sm:$0xff]   ;;  %v2876_v35 = vld [vmem:[#allocation7 + $0x70] ss:$8 sps:$4 sm:$0xff]  }
  0xcb   : > { %1076 = vmatprep.subr.bf16.mxu1 %v2859_v19  ;;  %v2877_v36 = vld [vmem:[#allocation7 + $0x84] ss:$8 sps:$4 sm:$0xff]   ;;  %v2879_v37 = vld [vmem:[#allocation7 + $0x80] ss:$8 sps:$4 sm:$0xff]   ;;  %v2880_v38 = vld [vmem:[#allocation7 + $0x94] ss:$8 sps:$4 sm:$0xff]  }
  0xcc   : > { %v2848_v39 = vld [vmem:[%s3664_s19 + $0x18] sm:$0xff]   ;;  %v2883_v41 = vld [vmem:[#allocation7 + $0xa4] ss:$8 sps:$4 sm:$0xff]   ;;  %v2885_v42 = vld [vmem:[#allocation7 + $0xa0] ss:$8 sps:$4 sm:$0xff]   ;;  %s4059_s16 = sld [smem:[#allocation22_spill]] }
  0xcd   : > { %714 = vmatpush1.bf16.msra.mxu0 %v2832_v8  ;;  %v2882_v40 = vld [vmem:[#allocation7 + $0x90] ss:$8 sps:$4 sm:$0xff]   ;;  %v2886_v43 = vld [vmem:[#allocation7 + $0xb4] ss:$8 sps:$4 sm:$0xff]   ;;  %v2849_v44 = vld [vmem:[%s3664_s19 + $0x20] sm:$0xff]   ;;  %s2490_s12 = sshll.u32 %s3660_s17, 7 }
  0xce   : > { %715 = vmatprep.subr.bf16.mxu0 %v2833_v9  ;;  %1077 = vmatpush1.bf16.msra.mxu1 %v2861_v21  ;;  %v2888_v45 = vld [vmem:[#allocation7 + $0xb0] ss:$8 sps:$4 sm:$0xff]   ;;  %v2889_v46 = vld [vmem:[#allocation7 + $0xc4] ss:$8 sps:$4 sm:$0xff]   ;;  %v2891_v47 = vld [vmem:[#allocation7 + $0xc0] ss:$8 sps:$4 sm:$0xff]  }
  0xcf   : > { %1078 = vmatprep.subr.bf16.mxu1 %v2862_v23  ;;  %v2892_v48 = vld [vmem:[#allocation7 + $0xd4] ss:$8 sps:$4 sm:$0xff]   ;;  %v2850_v49 = vld [vmem:[%s3664_s19 + $0x28] sm:$0xff]   ;;  %v2894_v52 = vld [vmem:[#allocation7 + $0xd0] ss:$8 sps:$4 sm:$0xff]   ;;  %s4060_s20 = sld [smem:[#allocation23_spill]] }
  0xd0   : > { %v2851_v50 = vld [vmem:[%s3664_s19 + $0x30] sm:$0xff]   ;;  %v2852_v51 = vld [vmem:[%s3664_s19 + $0x38] sm:$0xff]   ;;  %v2895_v53 = vld [vmem:[#allocation7 + $0xe4] ss:$8 sps:$4 sm:$0xff]   ;;  %s3910_s10 = scalar_lea.vmem [#allocation13], %s2490_s12  ;;  %s2636_s21 = sshll.u32 %s3432_s14, 11 }
  0xd1   : > { %716 = vmatpush1.bf16.msra.mxu0 %v2835_v10  ;;  %v2897_v54 = vld [vmem:[#allocation7 + $0xe0] ss:$8 sps:$4 sm:$0xff]   ;;  %v2898_v55 = vld [vmem:[#allocation7 + $0xf4] ss:$8 sps:$4 sm:$0xff]   ;;  %v2900_v56 = vld [vmem:[#allocation7 + $0xf0] ss:$8 sps:$4 sm:$0xff]  }
  0xd2   : > { %717 = vmatprep.subr.bf16.mxu0 %v2836_v11  ;;  %1079 = vmatpush1.bf16.msra.mxu1 %v2864_v25  ;;  %v2901_v57 = vld [vmem:[#allocation8] ss:$8 sps:$4 sm:$0xff]   ;;  %v2903_v58 = vld [vmem:[#allocation8 + $0x4] ss:$8 sps:$4 sm:$0xff]   ;;  %v2906_v59 = vld [vmem:[#allocation8 + $0x14] ss:$8 sps:$4 sm:$0xff]  }
  0xd3   : > { %1080 = vmatprep.subr.bf16.mxu1 %v2865_v26  ;;  %v2904_v60 = vld [vmem:[#allocation8 + $0x10] ss:$8 sps:$4 sm:$0xff]   ;;  %v2909_v61 = vld [vmem:[#allocation8 + $0x24] ss:$8 sps:$4 sm:$0xff]   ;;  %v2907_v62 = vld [vmem:[#allocation8 + $0x20] ss:$8 sps:$4 sm:$0xff]  }
  0xd4   : > { %v2912_v63 = vld [vmem:[#allocation8 + $0x34] ss:$8 sps:$4 sm:$0xff]   ;;  %v2915_v1 = vld [vmem:[#allocation8 + $0x44] ss:$8 sps:$4 sm:$0xff]   ;;  %v2913_v2 = vld [vmem:[#allocation8 + $0x40] ss:$8 sps:$4 sm:$0xff]  }
  0xd5   : > { %718 = vmatpush1.bf16.msra.mxu0 %v2838_v12  ;;  %v2918_v3 = vld [vmem:[#allocation8 + $0x54] ss:$8 sps:$4 sm:$0xff]   ;;  %v2916_v4 = vld [vmem:[#allocation8 + $0x50] ss:$8 sps:$4 sm:$0xff]   ;;  %v2921_v5 = vld [vmem:[#allocation8 + $0x64] ss:$8 sps:$4 sm:$0xff]  }
  0xd6   : > { %719 = vmatprep.subr.bf16.mxu0 %v2839_v13  ;;  %1081 = vmatpush1.bf16.msra.mxu1 %v2867_v27  ;;  %v2919_v6 = vld [vmem:[#allocation8 + $0x60] ss:$8 sps:$4 sm:$0xff]   ;;  %v2924_v7 = vld [vmem:[#allocation8 + $0x74] ss:$8 sps:$4 sm:$0xff]   ;;  %v2922_v8 = vld [vmem:[#allocation8 + $0x70] ss:$8 sps:$4 sm:$0xff]  }
  0xd7   : > { %1082 = vmatprep.subr.bf16.mxu1 %v2868_v28  ;;  %v2927_v9 = vld [vmem:[#allocation8 + $0x84] ss:$8 sps:$4 sm:$0xff]   ;;  %v2925_v10 = vld [vmem:[#allocation8 + $0x80] ss:$8 sps:$4 sm:$0xff]   ;;  %v2930_v11 = vld [vmem:[#allocation8 + $0x94] ss:$8 sps:$4 sm:$0xff]  }
  0xd8   : > { %v2928_v12 = vld [vmem:[#allocation8 + $0x90] ss:$8 sps:$4 sm:$0xff]   ;;  %v2933_v13 = vld [vmem:[#allocation8 + $0xa4] ss:$8 sps:$4 sm:$0xff]   ;;  %v2931_v14 = vld [vmem:[#allocation8 + $0xa0] ss:$8 sps:$4 sm:$0xff]  }
  0xd9   : > { %720 = vmatpush1.bf16.msra.mxu0 %v2841_v18  ;;  %v2936_v15 = vld [vmem:[#allocation8 + $0xb4] ss:$8 sps:$4 sm:$0xff]   ;;  %v2934_v16 = vld [vmem:[#allocation8 + $0xb0] ss:$8 sps:$4 sm:$0xff]   ;;  %v2939_v17 = vld [vmem:[#allocation8 + $0xc4] ss:$8 sps:$4 sm:$0xff]   ;;  %v569_v18 = vlaneseq }
  0xda   : > { %721 = vmatprep.subr.bf16.mxu0 %v2842_v20  ;;  %1083 = vmatpush1.bf16.msra.mxu1 %v2870_v30  ;;  %v2937_v19 = vld [vmem:[#allocation8 + $0xc0] ss:$8 sps:$4 sm:$0xff]   ;;  %v2942_v20 = vld [vmem:[#allocation8 + $0xd4] ss:$8 sps:$4 sm:$0xff]   ;;  %s2338_s14 = scalar_lea.sflag [#allocation4], %s3660_s17  ;;  %p4062_p4 = scmp.ne.s32.totalorder %s4046_s23, 0 }
  0xdb   : > { %1084 = vmatprep.subr.bf16.mxu1 %v2871_v31  ;;  %v570_v21 = vshrl.u32 %v569_v18, 7 }
  0xdd   : > { %722 = vmatpush1.bf16.msra.mxu0 %v2844_v22  ;;  %v2940_v22 = vld [vmem:[#allocation8 + $0xd0] ss:$8 sps:$4 sm:$0xff]   ;;  %v3698_v23 = vsub.s32 0, %v570_v21  ;;  %v3703_v25 = vsub.s32 1, %v570_v21 }
  0xde   : > { %1085 = vmatpush1.bf16.msra.mxu1 %v2873_v32  ;;  %1437 = vmatprep.subr.bf16.mxu0 %v2903_v58 }
  0xdf   : > { %1086 = vmatprep.subr.bf16.mxu1 %v2874_v33 }
  0xe0   : > { %740 = vmatmul.mubr.bf16.vlgmr.msra.gmra.mrb[0].mxu0 %v2845_v24  ;;  %v567_v24 = vld [vmem:[%s4017_s2] sm:$0x3] }
  0xe1   : > { %749 = vmatprep.mubr.bf16.mxu0 %v3337_v0  ;;  %1438 = vmatpush1.bf16.msra.mxu0 %v2901_v57  ;;  %v3706_v26 = vrot.slane %v567_v24, %v3698_v23  ;;  %v3709_v27 = vrot.slane %v567_v24, %v3703_v25 }
  0xe2   : > { %1087 = vmatpush1.bf16.msra.mxu1 %v2876_v35  ;;  %1439 = vmatprep.subr.bf16.mxu0 %v2906_v59 }
  0xe3   : > { %1088 = vmatprep.subr.bf16.mxu1 %v2877_v36 }
  0xe5   : > { %1440 = vmatpush1.bf16.msra.mxu0 %v2904_v60 }
  0xe6   : > { %1089 = vmatpush1.bf16.msra.mxu1 %v2879_v37  ;;  %1441 = vmatprep.subr.bf16.mxu0 %v2909_v61 }
  0xe7   : > { %1090 = vmatprep.subr.bf16.mxu1 %v2880_v38 }
  0xe8   : > { %750 = vmatmul.mubr.bf16.gmra.mrb[4].mxu0 %v2846_v29 }
  0xe9   : > { %759 = vmatprep.mubr.bf16.mxu0 %v3337_v0  ;;  %1442 = vmatpush1.bf16.msra.mxu0 %v2907_v62 }
  0xea   : > { %1091 = vmatpush1.bf16.msra.mxu1 %v2882_v40  ;;  %1443 = vmatprep.subr.bf16.mxu0 %v2912_v63 }
  0xeb   : > { %1092 = vmatprep.subr.bf16.mxu1 %v2883_v41 }
  0xee   : > { %1093 = vmatpush1.bf16.msra.mxu1 %v2885_v42 }
  0xef   : > { %1094 = vmatprep.subr.bf16.mxu1 %v2886_v43 }
  0xf0   : > { %760 = vmatmul.mubr.bf16.gmra.mrb[8].mxu0 %v2847_v34 }
  0xf1   : > { %769 = vmatprep.mubr.bf16.mxu0 %v3337_v0 }
  0xf2   : > { %1095 = vmatpush1.bf16.msra.mxu1 %v2888_v45 }
  0xf3   : > { %1096 = vmatprep.subr.bf16.mxu1 %v2889_v46 }
  0xf6   : > { %1097 = vmatpush1.bf16.msra.mxu1 %v2891_v47 }
  0xf7   : > { %1098 = vmatprep.subr.bf16.mxu1 %v2892_v48 }
  0xf8   : > { %770 = vmatmul.mubr.bf16.gmra.mrb[12].mxu0 %v2848_v39 }
  0xf9   : > { %779 = vmatprep.mubr.bf16.mxu0 %v3337_v0 }
  0xfa   : > { %1099 = vmatpush1.bf16.msra.mxu1 %v2894_v52 }
  0xfb   : > { %1100 = vmatprep.subr.bf16.mxu1 %v2895_v53 }
  0xfe   : > { %1101 = vmatpush1.bf16.msra.mxu1 %v2897_v54 }
  0xff   : > { %1102 = vmatprep.subr.bf16.mxu1 %v2898_v55 }
 0x100   : > { %780 = vmatmul.mubr.bf16.gmra.mrb[16].mxu0 %v2849_v44 }
 0x101   : > { %789 = vmatprep.mubr.bf16.mxu0 %v3337_v0 }
 0x102   : > { %1103 = vmatpush1.bf16.msra.mxu1 %v2900_v56 }
 0x108   : > { %790 = vmatmul.mubr.bf16.gmra.mrb[20].mxu0 %v2850_v49 }
 0x109   : > { %799 = vmatprep.mubr.bf16.mxu0 %v3337_v0 }
 0x110   : > { %800 = vmatmul.mubr.bf16.gmra.mrb[24].mxu0 %v2851_v50 }
 0x111   : > { %809 = vmatprep.mubr.bf16.mxu0 %v3337_v0  ;;  %v2910_v0 = vld [vmem:[#allocation8 + $0x30] ss:$8 sps:$4 sm:$0xff]  }
 0x112   : > { %1444 = vmatpush1.bf16.msra.mxu0 %v2910_v0 }
 0x113   : > { %1445 = vmatprep.subr.bf16.mxu0 %v2915_v1 }
 0x116   : > { %1446 = vmatpush1.bf16.msra.mxu0 %v2913_v2 }
 0x117   : > { %1447 = vmatprep.subr.bf16.mxu0 %v2918_v3 }
 0x118   : > { %810 = vmatmul.mubr.bf16.gmra.mrb[28].mxu0 %v2852_v51 }
 0x11a   : > { %1448 = vmatpush1.bf16.msra.mxu0 %v2916_v4 }
 0x11b   : > { %1449 = vmatprep.subr.bf16.mxu0 %v2921_v5 }
 0x11e   : > { %1450 = vmatpush1.bf16.msra.mxu0 %v2919_v6 }
 0x11f   : > { %1451 = vmatprep.subr.bf16.mxu0 %v2924_v7 }
 0x122   : > { %1452 = vmatpush1.bf16.msra.mxu0 %v2922_v8 }
 0x123   : > { %1453 = vmatprep.subr.bf16.mxu0 %v2927_v9 }
 0x126   : > { %1454 = vmatpush1.bf16.msra.mxu0 %v2925_v10 }
 0x127   : > { %1455 = vmatprep.subr.bf16.mxu0 %v2930_v11 }
 0x12a   : > { %1456 = vmatpush1.bf16.msra.mxu0 %v2928_v12 }
 0x12b   : > { %1457 = vmatprep.subr.bf16.mxu0 %v2933_v13 }
 0x12e   : > { %1458 = vmatpush1.bf16.msra.mxu0 %v2931_v14 }
 0x12f   : > { %1459 = vmatprep.subr.bf16.mxu0 %v2936_v15 }
 0x132   : > { %1460 = vmatpush1.bf16.msra.mxu0 %v2934_v16 }
 0x133   : > { %1461 = vmatprep.subr.bf16.mxu0 %v2939_v17 }
 0x136   : > { %1462 = vmatpush1.bf16.msra.mxu0 %v2937_v19 }
 0x137   : > { %1463 = vmatprep.subr.bf16.mxu0 %v2942_v20 }
 0x13a   : > { %1464 = vmatpush1.bf16.msra.mxu0 %v2940_v22 }
 0x1b3   : > { %v741_v28 = vpop.f32.mrb[0].mxu0 }
 0x1b4   : > { %v742_v29 = vadd.f32 %v741_v28, %v3706_v26  ;;  %v743_v30 = vpop.f32.mrb[1].mxu0 }
 0x1b5   : > { %v744_v31 = vadd.f32 %v743_v30, %v3709_v27  ;;  %v745_v32 = vpop.f32.mrb[2].mxu0 }
 0x1b6   : > { %v746_v33 = vadd.f32 %v745_v32, %v3706_v26  ;;  %v747_v34 = vpop.f32.mrb[3].mxu0  ;;  %v820_v36 = vmax.f32 %v742_v29, 0.0 }
 0x1b7   : > { %v748_v35 = vadd.f32 %v747_v34, %v3709_v27  ;;  %v821_v38 = vmax.f32 %v744_v31, 0.0 }
 0x1b8   : > { %v822_v37 = vmax.f32 %v746_v33, 0.0 }
 0x1b9   : > { %v823_v39 = vmax.f32 %v748_v35, 0.0 }
 0x1ba   : > { %v852_v40 = vpack.c.bf16 %v822_v37, %v820_v36 }
 0x1bb   : > { %v751_v41 = vpop.f32.mrb[4].mxu0  ;;  %v853_v42 = vpack.c.bf16 %v823_v39, %v821_v38 }
 0x1bc   : > { %v752_v43 = vadd.f32 %v751_v41, %v3706_v26  ;;  %v753_v44 = vpop.f32.mrb[5].mxu0 }
 0x1bd   : > { %v754_v45 = vadd.f32 %v753_v44, %v3709_v27  ;;  %v755_v46 = vpop.f32.mrb[6].mxu0  ;;  %1104 = vmatprep.mubr.bf16.mxu1 %v853_v42 }
 0x1be   : > { %v756_v47 = vadd.f32 %v755_v46, %v3706_v26  ;;  %v757_v48 = vpop.f32.mrb[7].mxu0  ;;  %1105 = vmatmul.mubr.bf16.vlgmr.msra.gmra.mrb[0].mxu1 %v852_v40  ;;  %v824_v50 = vmax.f32 %v752_v43, 0.0 }
 0x1bf   : > { %v758_v49 = vadd.f32 %v757_v48, %v3709_v27  ;;  %v825_v52 = vmax.f32 %v754_v45, 0.0 }
 0x1c0   : > { %v826_v51 = vmax.f32 %v756_v47, 0.0 }
 0x1c1   : > { %v827_v53 = vmax.f32 %v758_v49, 0.0 }
 0x1c2   : > { %v854_v54 = vpack.c.bf16 %v826_v51, %v824_v50 }
 0x1c3   : > { %v855_v55 = vpack.c.bf16 %v827_v53, %v825_v52  ;;  %v761_v56 = vpop.f32.mrb[8].mxu0 }
 0x1c4   : > { %v762_v57 = vadd.f32 %v761_v56, %v3706_v26  ;;  %v763_v58 = vpop.f32.mrb[9].mxu0 }
 0x1c5   : > { %v764_v59 = vadd.f32 %v763_v58, %v3709_v27  ;;  %v765_v60 = vpop.f32.mrb[10].mxu0  ;;  %1114 = vmatprep.mubr.bf16.mxu1 %v855_v55 }
 0x1c6   : > { %v766_v61 = vadd.f32 %v765_v60, %v3706_v26  ;;  %v767_v62 = vpop.f32.mrb[11].mxu0  ;;  %1115 = vmatmul.mubr.bf16.gmra.mrb[4].mxu1 %v854_v54  ;;  %v828_v0 = vmax.f32 %v762_v57, 0.0 }
 0x1c7   : > { %v768_v63 = vadd.f32 %v767_v62, %v3709_v27  ;;  %v829_v2 = vmax.f32 %v764_v59, 0.0 }
 0x1c8   : > { %v830_v1 = vmax.f32 %v766_v61, 0.0 }
 0x1c9   : > { %v831_v3 = vmax.f32 %v768_v63, 0.0 }
 0x1ca   : > { %v856_v4 = vpack.c.bf16 %v830_v1, %v828_v0 }
 0x1cb   : > { %v857_v5 = vpack.c.bf16 %v831_v3, %v829_v2  ;;  %v771_v6 = vpop.f32.mrb[12].mxu0 }
 0x1cc   : > { %v772_v7 = vadd.f32 %v771_v6, %v3706_v26  ;;  %v773_v8 = vpop.f32.mrb[13].mxu0 }
 0x1cd   : > { %v774_v9 = vadd.f32 %v773_v8, %v3709_v27  ;;  %v775_v10 = vpop.f32.mrb[14].mxu0  ;;  %1124 = vmatprep.mubr.bf16.mxu1 %v857_v5 }
 0x1ce   : > { %v776_v11 = vadd.f32 %v775_v10, %v3706_v26  ;;  %v777_v12 = vpop.f32.mrb[15].mxu0  ;;  %1125 = vmatmul.mubr.bf16.gmra.mrb[8].mxu1 %v856_v4  ;;  %v832_v14 = vmax.f32 %v772_v7, 0.0 }
 0x1cf   : > { %v778_v13 = vadd.f32 %v777_v12, %v3709_v27  ;;  %v833_v16 = vmax.f32 %v774_v9, 0.0 }
 0x1d0   : > { %v834_v15 = vmax.f32 %v776_v11, 0.0 }
 0x1d1   : > { %v835_v17 = vmax.f32 %v778_v13, 0.0 }
 0x1d2   : > { %v858_v18 = vpack.c.bf16 %v834_v15, %v832_v14 }
 0x1d3   : > { %v859_v19 = vpack.c.bf16 %v835_v17, %v833_v16  ;;  %v781_v20 = vpop.f32.mrb[16].mxu0  ;;  %v2945_v16 = vld [vmem:[#allocation8 + $0xe4] ss:$8 sps:$4 sm:$0xff]   ;;  %v2943_v17 = vld [vmem:[#allocation8 + $0xe0] ss:$8 sps:$4 sm:$0xff]  }
 0x1d4   : > { %v782_v21 = vadd.f32 %v781_v20, %v3706_v26  ;;  %v783_v22 = vpop.f32.mrb[17].mxu0  ;;  %1465 = vmatprep.subr.bf16.mxu0 %v2945_v16  ;;  %v2951_v20 = vld [vmem:[#allocation10 + $0x4] ss:$8 sps:$4 sm:$0xff]  }
 0x1d5   : > { %v784_v24 = vadd.f32 %v783_v22, %v3709_v27  ;;  %v785_v28 = vpop.f32.mrb[18].mxu0  ;;  %1134 = vmatprep.mubr.bf16.mxu1 %v859_v19  ;;  %1466 = vmatpush1.bf16.msra.mxu0 %v2943_v17  ;;  %v2946_v19 = vld [vmem:[#allocation8 + $0xf0] ss:$8 sps:$4 sm:$0xff]   ;;  %v2957_v22 = vld [vmem:[#allocation10 + $0x24] ss:$8 sps:$4 sm:$0xff]  }
 0x1d6   : > { %v786_v29 = vadd.f32 %v785_v28, %v3706_v26  ;;  %v787_v30 = vpop.f32.mrb[19].mxu0  ;;  %1135 = vmatmul.mubr.bf16.gmra.mrb[12].mxu1 %v858_v18  ;;  %v836_v32 = vmax.f32 %v782_v21, 0.0  ;;  %v2948_v18 = vld [vmem:[#allocation8 + $0xf4] ss:$8 sps:$4 sm:$0xff]   ;;  %1802 = vmatprep.subr.bf16.mxu1 %v2951_v20 }
 0x1d7   : > { %v788_v31 = vadd.f32 %v787_v30, %v3709_v27  ;;  %v837_v34 = vmax.f32 %v784_v24, 0.0  ;;  %1467 = vmatprep.subr.bf16.mxu0 %v2948_v18  ;;  %v2954_v21 = vld [vmem:[#allocation10 + $0x14] ss:$8 sps:$4 sm:$0xff]   ;;  %v2955_v24 = vld [vmem:[#allocation10 + $0x20] ss:$8 sps:$4 sm:$0xff]  }
 0x1d8   : > { %v838_v33 = vmax.f32 %v786_v29, 0.0  ;;  %v2960_v28 = vld [vmem:[#allocation10 + $0x34] ss:$8 sps:$4 sm:$0xff]   ;;  %v2958_v29 = vld [vmem:[#allocation10 + $0x30] ss:$8 sps:$4 sm:$0xff]  }
 0x1d9   : > { %v839_v35 = vmax.f32 %v788_v31, 0.0  ;;  %1468 = vmatpush1.bf16.msra.mxu0 %v2946_v19  ;;  %v2963_v30 = vld [vmem:[#allocation10 + $0x44] ss:$8 sps:$4 sm:$0xff]   ;;  %v2961_v31 = vld [vmem:[#allocation10 + $0x40] ss:$8 sps:$4 sm:$0xff]  }
 0x1da   : > { %v860_v36 = vpack.c.bf16 %v838_v33, %v836_v32  ;;  %v2966_v32 = vld [vmem:[#allocation10 + $0x54] ss:$8 sps:$4 sm:$0xff]   ;;  %v2964_v33 = vld [vmem:[#allocation10 + $0x50] ss:$8 sps:$4 sm:$0xff]  }
 0x1db   : > { %v861_v37 = vpack.c.bf16 %v839_v35, %v837_v34  ;;  %v791_v38 = vpop.f32.mrb[20].mxu0  ;;  %v2969_v34 = vld [vmem:[#allocation10 + $0x64] ss:$8 sps:$4 sm:$0xff]   ;;  %v2967_v35 = vld [vmem:[#allocation10 + $0x60] ss:$8 sps:$4 sm:$0xff]  }
 0x1dc   : > { %v792_v39 = vadd.f32 %v791_v38, %v3706_v26  ;;  %v793_v40 = vpop.f32.mrb[21].mxu0  ;;  %v2975_v38 = vld [vmem:[#allocation10 + $0x84] ss:$8 sps:$4 sm:$0xff]  }
 0x1dd   : > { %v794_v41 = vadd.f32 %v793_v40, %v3709_v27  ;;  %v795_v42 = vpop.f32.mrb[22].mxu0  ;;  %1144 = vmatprep.mubr.bf16.mxu1 %v861_v37  ;;  %v2970_v37 = vld [vmem:[#allocation10 + $0x70] ss:$8 sps:$4 sm:$0xff]   ;;  %v2978_v40 = vld [vmem:[#allocation10 + $0x94] ss:$8 sps:$4 sm:$0xff]  }
 0x1de   : > { %v796_v43 = vadd.f32 %v795_v42, %v3706_v26  ;;  %v797_v44 = vpop.f32.mrb[23].mxu0  ;;  %1145 = vmatmul.mubr.bf16.gmra.mrb[16].mxu1 %v860_v36  ;;  %v840_v46 = vmax.f32 %v792_v39, 0.0  ;;  %v2972_v36 = vld [vmem:[#allocation10 + $0x74] ss:$8 sps:$4 sm:$0xff]   ;;  %v2973_v39 = vld [vmem:[#allocation10 + $0x80] ss:$8 sps:$4 sm:$0xff]  }
 0x1df   : > { %v798_v45 = vadd.f32 %v797_v44, %v3709_v27  ;;  %v841_v48 = vmax.f32 %v794_v41, 0.0  ;;  %v2976_v41 = vld [vmem:[#allocation10 + $0x90] ss:$8 sps:$4 sm:$0xff]   ;;  %v2981_v42 = vld [vmem:[#allocation10 + $0xa4] ss:$8 sps:$4 sm:$0xff]  }
 0x1e0   : > { %v842_v47 = vmax.f32 %v796_v43, 0.0  ;;  %v2979_v43 = vld [vmem:[#allocation10 + $0xa0] ss:$8 sps:$4 sm:$0xff]   ;;  %v2984_v44 = vld [vmem:[#allocation10 + $0xb4] ss:$8 sps:$4 sm:$0xff]  }
 0x1e1   : > { %v843_v49 = vmax.f32 %v798_v45, 0.0  ;;  %v2982_v45 = vld [vmem:[#allocation10 + $0xb0] ss:$8 sps:$4 sm:$0xff]  }
 0x1e2   : > { %v862_v50 = vpack.c.bf16 %v842_v47, %v840_v46  ;;  %v2987_v46 = vld [vmem:[#allocation10 + $0xc4] ss:$8 sps:$4 sm:$0xff]   ;;  %v2985_v47 = vld [vmem:[#allocation10 + $0xc0] ss:$8 sps:$4 sm:$0xff]  }
 0x1e3   : > { %v863_v51 = vpack.c.bf16 %v843_v49, %v841_v48  ;;  %v801_v52 = vpop.f32.mrb[24].mxu0  ;;  %v2990_v48 = vld [vmem:[#allocation10 + $0xd4] ss:$8 sps:$4 sm:$0xff]   ;;  %v2988_v49 = vld [vmem:[#allocation10 + $0xd0] ss:$8 sps:$4 sm:$0xff]  }
 0x1e4   : > { %v802_v53 = vadd.f32 %v801_v52, %v3706_v26  ;;  %v803_v54 = vpop.f32.mrb[25].mxu0 }
 0x1e5   : > { %v804_v55 = vadd.f32 %v803_v54, %v3709_v27  ;;  %v805_v56 = vpop.f32.mrb[26].mxu0  ;;  %1154 = vmatprep.mubr.bf16.mxu1 %v863_v51 }
 0x1e6   : > { %v806_v57 = vadd.f32 %v805_v56, %v3706_v26  ;;  %v807_v58 = vpop.f32.mrb[27].mxu0  ;;  %1155 = vmatmul.mubr.bf16.gmra.mrb[20].mxu1 %v862_v50  ;;  %v844_v60 = vmax.f32 %v802_v53, 0.0  ;;  %v900_v50 = vld [vmem:[%s4019_s4] sm:$0x3] }
 0x1e7   : > { %v808_v59 = vadd.f32 %v807_v58, %v3709_v27  ;;  %v845_v62 = vmax.f32 %v804_v55, 0.0  ;;  %v3747_v51 = vrot.slane %v900_v50, %v3698_v23  ;;  %v3750_v52 = vrot.slane %v900_v50, %v3703_v25 }
 0x1e8   : > { %v846_v61 = vmax.f32 %v806_v57, 0.0 }
 0x1e9   : > { %v847_v63 = vmax.f32 %v808_v59, 0.0 }
 0x1ea   : > { %v864_v0 = vpack.c.bf16 %v846_v61, %v844_v60 }
 0x1eb   : > { %v865_v1 = vpack.c.bf16 %v847_v63, %v845_v62  ;;  %v811_v2 = vpop.f32.mrb[28].mxu0 }
 0x1ec   : > { %v812_v3 = vadd.f32 %v811_v2, %v3706_v26  ;;  %v813_v4 = vpop.f32.mrb[29].mxu0 }
 0x1ed   : > { %v814_v5 = vadd.f32 %v813_v4, %v3709_v27  ;;  %v815_v6 = vpop.f32.mrb[30].mxu0  ;;  %1164 = vmatprep.mubr.bf16.mxu1 %v865_v1 }
 0x1ee   : > { %v816_v7 = vadd.f32 %v815_v6, %v3706_v26  ;;  %v817_v8 = vpop.f32.mrb[31].mxu0  ;;  %1165 = vmatmul.mubr.bf16.gmra.mrb[24].mxu1 %v864_v0  ;;  %v848_v10 = vmax.f32 %v812_v3, 0.0  ;;  %v2949_v26 = vld [vmem:[#allocation10] ss:$8 sps:$4 sm:$0xff]  }
 0x1ef   : > { %v818_v9 = vadd.f32 %v817_v8, %v3709_v27  ;;  %v849_v12 = vmax.f32 %v814_v5, 0.0  ;;  %1803 = vmatpush1.bf16.msra.mxu1 %v2949_v26  ;;  %v2952_v27 = vld [vmem:[#allocation10 + $0x10] ss:$8 sps:$4 sm:$0xff]  }
 0x1f0   : > { %v850_v11 = vmax.f32 %v816_v7, 0.0  ;;  %1804 = vmatprep.subr.bf16.mxu1 %v2954_v21 }
 0x1f1   : > { %v851_v13 = vmax.f32 %v818_v9, 0.0 }
 0x1f2   : > { %v866_v14 = vpack.c.bf16 %v850_v11, %v848_v10 }
 0x1f3   : > { %v867_v15 = vpack.c.bf16 %v851_v13, %v849_v12  ;;  %1805 = vmatpush1.bf16.msra.mxu1 %v2952_v27 }
 0x1f4   : > { %1806 = vmatprep.subr.bf16.mxu1 %v2957_v22 }
 0x1f5   : > { %1174 = vmatprep.mubr.bf16.mxu1 %v867_v15 }
 0x1f6   : > { %1175 = vmatmul.mubr.bf16.gmra.mrb[28].mxu1 %v866_v14 }
 0x1f7   : > { %1807 = vmatpush1.bf16.msra.mxu1 %v2955_v24 }
 0x1f8   : > { %1808 = vmatprep.subr.bf16.mxu1 %v2960_v28 }
 0x1fb   : > { %1809 = vmatpush1.bf16.msra.mxu1 %v2958_v29 }
 0x1fc   : > { %1810 = vmatprep.subr.bf16.mxu1 %v2963_v30 }
 0x1ff   : > { %1811 = vmatpush1.bf16.msra.mxu1 %v2961_v31 }
 0x200   : > { %1812 = vmatprep.subr.bf16.mxu1 %v2966_v32 }
 0x203   : > { %1813 = vmatpush1.bf16.msra.mxu1 %v2964_v33 }
 0x204   : > { %1814 = vmatprep.subr.bf16.mxu1 %v2969_v34 }
 0x207   : > { %1815 = vmatpush1.bf16.msra.mxu1 %v2967_v35 }
 0x208   : > { %1816 = vmatprep.subr.bf16.mxu1 %v2972_v36 }
 0x20b   : > { %1817 = vmatpush1.bf16.msra.mxu1 %v2970_v37 }
 0x20c   : > { %1818 = vmatprep.subr.bf16.mxu1 %v2975_v38 }
 0x20f   : > { %1819 = vmatpush1.bf16.msra.mxu1 %v2973_v39 }
 0x210   : > { %1820 = vmatprep.subr.bf16.mxu1 %v2978_v40 }
 0x213   : > { %1821 = vmatpush1.bf16.msra.mxu1 %v2976_v41 }
 0x214   : > { %1822 = vmatprep.subr.bf16.mxu1 %v2981_v42 }
 0x217   : > { %1823 = vmatpush1.bf16.msra.mxu1 %v2979_v43 }
 0x218   : > { %1824 = vmatprep.subr.bf16.mxu1 %v2984_v44 }
 0x21b   : > { %1825 = vmatpush1.bf16.msra.mxu1 %v2982_v45 }
 0x21c   : > { %1826 = vmatprep.subr.bf16.mxu1 %v2987_v46 }
 0x21f   : > { %1827 = vmatpush1.bf16.msra.mxu1 %v2985_v47 }
 0x220   : > { %1828 = vmatprep.subr.bf16.mxu1 %v2990_v48 }
 0x223   : > { %1829 = vmatpush1.bf16.msra.mxu1 %v2988_v49 }
 0x291   : > { %v1106_v53 = vpop.f32.mrb[0].mxu1 }
 0x292   : > { %v1107_v54 = vadd.f32 %v1106_v53, %v3747_v51  ;;  %v1108_v55 = vpop.f32.mrb[1].mxu1 }
 0x293   : > { %v1109_v56 = vadd.f32 %v1108_v55, %v3750_v52  ;;  %v1110_v57 = vpop.f32.mrb[2].mxu1 }
 0x294   : > { %v1111_v58 = vadd.f32 %v1110_v57, %v3747_v51  ;;  %v1112_v59 = vpop.f32.mrb[3].mxu1  ;;  %v1185_v61 = vmax.f32 %v1107_v54, 0.0 }
 0x295   : > { %v1113_v60 = vadd.f32 %v1112_v59, %v3750_v52  ;;  %v1186_v63 = vmax.f32 %v1109_v56, 0.0 }
 0x296   : > { %v1187_v62 = vmax.f32 %v1111_v58, 0.0 }
 0x297   : > { %v1188_v0 = vmax.f32 %v1113_v60, 0.0 }
 0x298   : > { %v1217_v1 = vpack.c.bf16 %v1187_v62, %v1185_v61 }
 0x299   : > { %v1218_v2 = vpack.c.bf16 %v1188_v0, %v1186_v63  ;;  %v1116_v3 = vpop.f32.mrb[4].mxu1 }
 0x29a   : > { %v1117_v4 = vadd.f32 %v1116_v3, %v3747_v51  ;;  %v1118_v5 = vpop.f32.mrb[5].mxu1 }
 0x29b   : > { %v1119_v6 = vadd.f32 %v1118_v5, %v3750_v52  ;;  %v1120_v7 = vpop.f32.mrb[6].mxu1  ;;  %1469 = vmatprep.mubr.bf16.mxu0 %v1218_v2 }
 0x29c   : > { %v1121_v8 = vadd.f32 %v1120_v7, %v3747_v51  ;;  %v1122_v9 = vpop.f32.mrb[7].mxu1  ;;  %1470 = vmatmul.mubr.bf16.vlgmr.msra.gmra.mrb[32].mxu0 %v1217_v1  ;;  %v1189_v11 = vmax.f32 %v1117_v4, 0.0 }
 0x29d   : > { %v1123_v10 = vadd.f32 %v1122_v9, %v3750_v52  ;;  %v1190_v13 = vmax.f32 %v1119_v6, 0.0 }
 0x29e   : > { %v1191_v12 = vmax.f32 %v1121_v8, 0.0 }
 0x29f   : > { %v1192_v14 = vmax.f32 %v1123_v10, 0.0 }
 0x2a0   : > { %v1219_v15 = vpack.c.bf16 %v1191_v12, %v1189_v11 }
 0x2a1   : > { %v1220_v16 = vpack.c.bf16 %v1192_v14, %v1190_v13  ;;  %v1126_v17 = vpop.f32.mrb[8].mxu1 }
 0x2a2   : > { %v1127_v18 = vadd.f32 %v1126_v17, %v3747_v51  ;;  %v1128_v19 = vpop.f32.mrb[9].mxu1 }
 0x2a3   : > { %v1129_v26 = vadd.f32 %v1128_v19, %v3750_v52  ;;  %v1130_v20 = vpop.f32.mrb[10].mxu1  ;;  %1479 = vmatprep.mubr.bf16.mxu0 %v1220_v16 }
 0x2a4   : > { %v1131_v21 = vadd.f32 %v1130_v20, %v3747_v51  ;;  %v1132_v27 = vpop.f32.mrb[11].mxu1  ;;  %1480 = vmatmul.mubr.bf16.gmra.mrb[36].mxu0 %v1219_v15  ;;  %v1193_v24 = vmax.f32 %v1127_v18, 0.0 }
 0x2a5   : > { %v1133_v22 = vadd.f32 %v1132_v27, %v3750_v52  ;;  %v1194_v29 = vmax.f32 %v1129_v26, 0.0 }
 0x2a6   : > { %v1195_v28 = vmax.f32 %v1131_v21, 0.0 }
 0x2a7   : > { %v1196_v30 = vmax.f32 %v1133_v22, 0.0 }
 0x2a8   : > { %v1221_v31 = vpack.c.bf16 %v1195_v28, %v1193_v24 }
 0x2a9   : > { %v1222_v32 = vpack.c.bf16 %v1196_v30, %v1194_v29  ;;  %v1136_v33 = vpop.f32.mrb[12].mxu1 }
 0x2aa   : > { %v1137_v34 = vadd.f32 %v1136_v33, %v3747_v51  ;;  %v1138_v35 = vpop.f32.mrb[13].mxu1 }
 0x2ab   : > { %v1139_v36 = vadd.f32 %v1138_v35, %v3750_v52  ;;  %v1140_v37 = vpop.f32.mrb[14].mxu1  ;;  %1489 = vmatprep.mubr.bf16.mxu0 %v1222_v32 }
 0x2ac   : > { %v1141_v38 = vadd.f32 %v1140_v37, %v3747_v51  ;;  %v1142_v39 = vpop.f32.mrb[15].mxu1  ;;  %1490 = vmatmul.mubr.bf16.gmra.mrb[40].mxu0 %v1221_v31  ;;  %v1197_v41 = vmax.f32 %v1137_v34, 0.0 }
 0x2ad   : > { %v1143_v40 = vadd.f32 %v1142_v39, %v3750_v52  ;;  %v1198_v43 = vmax.f32 %v1139_v36, 0.0 }
 0x2ae   : > { %v1199_v42 = vmax.f32 %v1141_v38, 0.0 }
 0x2af   : > { %v1200_v44 = vmax.f32 %v1143_v40, 0.0 }
 0x2b0   : > { %v1223_v45 = vpack.c.bf16 %v1199_v42, %v1197_v41 }
 0x2b1   : > { %v1224_v46 = vpack.c.bf16 %v1200_v44, %v1198_v43  ;;  %v1146_v47 = vpop.f32.mrb[16].mxu1  ;;  %v2993_v43 = vld [vmem:[#allocation10 + $0xe4] ss:$8 sps:$4 sm:$0xff]   ;;  %v2991_v44 = vld [vmem:[#allocation10 + $0xe0] ss:$8 sps:$4 sm:$0xff]  }
 0x2b2   : > { %v1147_v48 = vadd.f32 %v1146_v47, %v3747_v51  ;;  %v1148_v49 = vpop.f32.mrb[17].mxu1  ;;  %1830 = vmatprep.subr.bf16.mxu1 %v2993_v43  ;;  %v2998_v47 = vld [vmem:[#allocation11] sm:$0xff]  }
 0x2b3   : > { %v1149_v50 = vadd.f32 %v1148_v49, %v3750_v52  ;;  %v1150_v53 = vpop.f32.mrb[18].mxu1  ;;  %1499 = vmatprep.mubr.bf16.mxu0 %v1224_v46  ;;  %1831 = vmatpush1.bf16.msra.mxu1 %v2991_v44  ;;  %v2994_v46 = vld [vmem:[#allocation10 + $0xf0] ss:$8 sps:$4 sm:$0xff]  }
 0x2b4   : > { %v1151_v54 = vadd.f32 %v1150_v53, %v3747_v51  ;;  %v1152_v55 = vpop.f32.mrb[19].mxu1  ;;  %1500 = vmatmul.mubr.bf16.gmra.mrb[44].mxu0 %v1223_v45  ;;  %v1201_v57 = vmax.f32 %v1147_v48, 0.0  ;;  %v2996_v45 = vld [vmem:[#allocation10 + $0xf4] ss:$8 sps:$4 sm:$0xff]   ;;  %v2999_v48 = vld [vmem:[#allocation11 + $0x48] sm:$0xff]  }
 0x2b5   : > { %v1153_v56 = vadd.f32 %v1152_v55, %v3750_v52  ;;  %v1202_v59 = vmax.f32 %v1149_v50, 0.0  ;;  %1832 = vmatprep.subr.bf16.mxu1 %v2996_v45  ;;  %v3001_v49 = vld [vmem:[#allocation11 + $0x50] sm:$0xff]   ;;  %v3003_v53 = vld [vmem:[#allocation11 + $0x58] sm:$0xff]   ;;  %v3786_v55 = vld [vmem:[#allocation11 + $0x60] sm:$0xff]  }
 0x2b6   : > { %v1203_v58 = vmax.f32 %v1151_v54, 0.0  ;;  %v3002_v50 = vld [vmem:[#allocation11 + $0x10] sm:$0xff]   ;;  %v3784_v54 = vld [vmem:[#allocation11 + $0x18] sm:$0xff]  }
 0x2b7   : > { %v1204_v60 = vmax.f32 %v1153_v56, 0.0  ;;  %1833 = vmatpush1.bf16.msra.mxu1 %v2994_v46  ;;  %v3789_v56 = vld [vmem:[#allocation11 + $0x20] sm:$0xff]  }
 0x2b8   : > { %v1225_v61 = vpack.c.bf16 %v1203_v58, %v1201_v57  ;;  %v3792_v57 = vld [vmem:[#allocation11 + $0x68] sm:$0xff]   ;;  %v1265_v58 = vld [vmem:[%s4021_s6] sm:$0x3] }
 0x2b9   : > { %v1226_v62 = vpack.c.bf16 %v1204_v60, %v1202_v59  ;;  %v1156_v63 = vpop.f32.mrb[20].mxu1  ;;  %v3800_v59 = vrot.slane %v1265_v58, %v3698_v23  ;;  %v3803_v60 = vrot.slane %v1265_v58, %v3703_v25 }
 0x2ba   : > { %v1157_v0 = vadd.f32 %v1156_v63, %v3747_v51  ;;  %v1158_v1 = vpop.f32.mrb[21].mxu1 }
 0x2bb   : > { %v1159_v2 = vadd.f32 %v1158_v1, %v3750_v52  ;;  %v1160_v3 = vpop.f32.mrb[22].mxu1  ;;  %1509 = vmatprep.mubr.bf16.mxu0 %v1226_v62 }
 0x2bc   : > { %v1161_v4 = vadd.f32 %v1160_v3, %v3747_v51  ;;  %v1162_v5 = vpop.f32.mrb[23].mxu1  ;;  %1510 = vmatmul.mubr.bf16.gmra.mrb[48].mxu0 %v1225_v61  ;;  %v1205_v7 = vmax.f32 %v1157_v0, 0.0 }
 0x2bd   : > { %v1163_v6 = vadd.f32 %v1162_v5, %v3750_v52  ;;  %v1206_v9 = vmax.f32 %v1159_v2, 0.0 }
 0x2be   : > { %v1207_v8 = vmax.f32 %v1161_v4, 0.0 }
 0x2bf   : > { %v1208_v10 = vmax.f32 %v1163_v6, 0.0 }
 0x2c0   : > { %v1227_v11 = vpack.c.bf16 %v1207_v8, %v1205_v7 }
 0x2c1   : > { %v1228_v12 = vpack.c.bf16 %v1208_v10, %v1206_v9  ;;  %v1166_v13 = vpop.f32.mrb[24].mxu1 }
 0x2c2   : > { %v1167_v14 = vadd.f32 %v1166_v13, %v3747_v51  ;;  %v1168_v15 = vpop.f32.mrb[25].mxu1 }
 0x2c3   : > { %v1169_v16 = vadd.f32 %v1168_v15, %v3750_v52  ;;  %v1170_v17 = vpop.f32.mrb[26].mxu1  ;;  %1519 = vmatprep.mubr.bf16.mxu0 %v1228_v12 }
 0x2c4   : > { %v1171_v18 = vadd.f32 %v1170_v17, %v3747_v51  ;;  %v1172_v19 = vpop.f32.mrb[27].mxu1  ;;  %1520 = vmatmul.mubr.bf16.gmra.mrb[52].mxu0 %v1227_v11  ;;  %v1209_v20 = vmax.f32 %v1167_v14, 0.0 }
 0x2c5   : > { %v1173_v26 = vadd.f32 %v1172_v19, %v3750_v52  ;;  %v1210_v27 = vmax.f32 %v1169_v16, 0.0 }
 0x2c6   : > { %v1211_v21 = vmax.f32 %v1171_v18, 0.0 }
 0x2c7   : > { %v1212_v22 = vmax.f32 %v1173_v26, 0.0 }
 0x2c8   : > { %v1229_v24 = vpack.c.bf16 %v1211_v21, %v1209_v20 }
 0x2c9   : > { %v1230_v28 = vpack.c.bf16 %v1212_v22, %v1210_v27  ;;  %v1176_v29 = vpop.f32.mrb[28].mxu1 }
 0x2ca   : > { %v1177_v30 = vadd.f32 %v1176_v29, %v3747_v51  ;;  %v1178_v31 = vpop.f32.mrb[29].mxu1 }
 0x2cb   : > { %v1179_v32 = vadd.f32 %v1178_v31, %v3750_v52  ;;  %v1180_v33 = vpop.f32.mrb[30].mxu1  ;;  %1529 = vmatprep.mubr.bf16.mxu0 %v1230_v28 }
 0x2cc   : > { %v1181_v34 = vadd.f32 %v1180_v33, %v3747_v51  ;;  %v1182_v35 = vpop.f32.mrb[31].mxu1  ;;  %1530 = vmatmul.mubr.bf16.gmra.mrb[56].mxu0 %v1229_v24  ;;  %v1213_v37 = vmax.f32 %v1177_v30, 0.0  ;;  %v2997_v51 = vld [vmem:[#allocation11 + $0x40] sm:$0xff]  }
 0x2cd   : > { %v1183_v36 = vadd.f32 %v1182_v35, %v3750_v52  ;;  %v1214_v39 = vmax.f32 %v1179_v32, 0.0  ;;  %2637 = vmatprep.subr.bf16.mxu0 %v2997_v51  ;;  %2701 = vmatprep.subr.bf16.mxu1 %v2997_v51  ;;  %v3000_v52 = vld [vmem:[#allocation11 + $0x8] sm:$0xff]  }
 0x2ce   : > { %v1215_v38 = vmax.f32 %v1181_v34, 0.0  ;;  %2638 = vmatpush3.bf16.msra.mxu0 %v2998_v47 }
 0x2cf   : > { %v1216_v40 = vmax.f32 %v1183_v36, 0.0  ;;  %2639 = vmatprep.subr.bf16.mxu0 %v2999_v48 }
 0x2d0   : > { %v1231_v41 = vpack.c.bf16 %v1215_v38, %v1213_v37 }
 0x2d1   : > { %v1232_v42 = vpack.c.bf16 %v1216_v40, %v1214_v39 }
 0x2d2   : > { %2640 = vmatpush3.bf16.msra.mxu0 %v3000_v52 }
 0x2d3   : > { %1539 = vmatprep.mubr.bf16.mxu0 %v1232_v42  ;;  %2641 = vmatprep.subr.bf16.mxu0 %v3001_v49 }
 0x2d4   : > { %1540 = vmatmul.mubr.bf16.gmra.mrb[60].mxu0 %v1231_v41 }
 0x2d6   : > { %2642 = vmatpush3.bf16.msra.mxu0 %v3002_v50 }
 0x2d7   : > { %2643 = vmatprep.subr.bf16.mxu0 %v3003_v53 }
 0x2da   : > { %2644 = vmatpush3.bf16.msra.mxu0 %v3784_v54 }
 0x2db   : > { %2645 = vmatprep.subr.bf16.mxu0 %v3786_v55 }
 0x2de   : > { %2646 = vmatpush3.bf16.msra.mxu0 %v3789_v56 }
 0x2df   : > { %2647 = vmatprep.subr.bf16.mxu0 %v3792_v57 }
 0x36f   : > { %v1471_v61 = vpop.f32.mrb[32].mxu0 }
 0x370   : > { %v1472_v62 = vadd.f32 %v1471_v61, %v3800_v59  ;;  %v1473_v63 = vpop.f32.mrb[33].mxu0 }
 0x371   : > { %v1474_v0 = vadd.f32 %v1473_v63, %v3803_v60  ;;  %v1475_v1 = vpop.f32.mrb[34].mxu0 }
 0x372   : > { %v1476_v2 = vadd.f32 %v1475_v1, %v3800_v59  ;;  %v1477_v3 = vpop.f32.mrb[35].mxu0  ;;  %v1550_v5 = vmax.f32 %v1472_v62, 0.0 }
 0x373   : > { %v1478_v4 = vadd.f32 %v1477_v3, %v3803_v60  ;;  %v1551_v7 = vmax.f32 %v1474_v0, 0.0 }
 0x374   : > { %v1552_v6 = vmax.f32 %v1476_v2, 0.0 }
 0x375   : > { %v1553_v8 = vmax.f32 %v1478_v4, 0.0 }
 0x376   : > { %v1582_v9 = vpack.c.bf16 %v1552_v6, %v1550_v5 }
 0x377   : > { %v1583_v10 = vpack.c.bf16 %v1553_v8, %v1551_v7  ;;  %v1481_v11 = vpop.f32.mrb[36].mxu0 }
 0x378   : > { %v1482_v12 = vadd.f32 %v1481_v11, %v3800_v59  ;;  %v1483_v13 = vpop.f32.mrb[37].mxu0 }
 0x379   : > { %v1484_v14 = vadd.f32 %v1483_v13, %v3803_v60  ;;  %v1485_v15 = vpop.f32.mrb[38].mxu0  ;;  %1834 = vmatprep.mubr.bf16.mxu1 %v1583_v10 }
 0x37a   : > { %v1486_v16 = vadd.f32 %v1485_v15, %v3800_v59  ;;  %v1487_v17 = vpop.f32.mrb[39].mxu0  ;;  %1835 = vmatmul.mubr.bf16.vlgmr.msra.gmra.mrb[32].mxu1 %v1582_v9  ;;  %v1554_v19 = vmax.f32 %v1482_v12, 0.0 }
 0x37b   : > { %v1488_v18 = vadd.f32 %v1487_v17, %v3803_v60  ;;  %2709 = vmatpush3.bf16.msra.mxu1 %v2998_v47  ;;  %v1555_v20 = vmax.f32 %v1484_v14, 0.0 }
 0x37c   : > { %v1556_v26 = vmax.f32 %v1486_v16, 0.0  ;;  %2702 = vmatprep.subr.bf16.mxu1 %v2999_v48 }
 0x37d   : > { %v1557_v21 = vmax.f32 %v1488_v18, 0.0 }
 0x37e   : > { %v1584_v27 = vpack.c.bf16 %v1556_v26, %v1554_v19 }
 0x37f   : > { %v1585_v22 = vpack.c.bf16 %v1557_v21, %v1555_v20  ;;  %v1491_v24 = vpop.f32.mrb[40].mxu0  ;;  %2710 = vmatpush3.bf16.msra.mxu1 %v3000_v52 }
 0x380   : > { %v1492_v28 = vadd.f32 %v1491_v24, %v3800_v59  ;;  %v1493_v29 = vpop.f32.mrb[41].mxu0  ;;  %2703 = vmatprep.subr.bf16.mxu1 %v3001_v49 }
 0x381   : > { %v1494_v30 = vadd.f32 %v1493_v29, %v3803_v60  ;;  %v1495_v31 = vpop.f32.mrb[42].mxu0  ;;  %1844 = vmatprep.mubr.bf16.mxu1 %v1585_v22 }
 0x382   : > { %v1496_v32 = vadd.f32 %v1495_v31, %v3800_v59  ;;  %v1497_v33 = vpop.f32.mrb[43].mxu0  ;;  %1845 = vmatmul.mubr.bf16.gmra.mrb[36].mxu1 %v1584_v27  ;;  %v1558_v35 = vmax.f32 %v1492_v28, 0.0 }
 0x383   : > { %v1498_v34 = vadd.f32 %v1497_v33, %v3803_v60  ;;  %2711 = vmatpush3.bf16.msra.mxu1 %v3002_v50  ;;  %v1559_v37 = vmax.f32 %v1494_v30, 0.0 }
 0x384   : > { %v1560_v36 = vmax.f32 %v1496_v32, 0.0  ;;  %2704 = vmatprep.subr.bf16.mxu1 %v3003_v53 }
 0x385   : > { %v1561_v38 = vmax.f32 %v1498_v34, 0.0 }
 0x386   : > { %v1586_v39 = vpack.c.bf16 %v1560_v36, %v1558_v35 }
 0x387   : > { %v1587_v40 = vpack.c.bf16 %v1561_v38, %v1559_v37  ;;  %v1501_v41 = vpop.f32.mrb[44].mxu0  ;;  %2712 = vmatpush3.bf16.msra.mxu1 %v3784_v54 }
 0x388   : > { %v1502_v42 = vadd.f32 %v1501_v41, %v3800_v59  ;;  %v1503_v43 = vpop.f32.mrb[45].mxu0  ;;  %2705 = vmatprep.subr.bf16.mxu1 %v3786_v55 }
 0x389   : > { %v1504_v44 = vadd.f32 %v1503_v43, %v3803_v60  ;;  %v1505_v45 = vpop.f32.mrb[46].mxu0  ;;  %1854 = vmatprep.mubr.bf16.mxu1 %v1587_v40 }
 0x38a   : > { %v1506_v46 = vadd.f32 %v1505_v45, %v3800_v59  ;;  %v1507_v51 = vpop.f32.mrb[47].mxu0  ;;  %1855 = vmatmul.mubr.bf16.gmra.mrb[40].mxu1 %v1586_v39  ;;  %v1562_v48 = vmax.f32 %v1502_v42, 0.0 }
 0x38b   : > { %v1508_v47 = vadd.f32 %v1507_v51, %v3803_v60  ;;  %2713 = vmatpush3.bf16.msra.mxu1 %v3789_v56  ;;  %v1563_v49 = vmax.f32 %v1504_v44, 0.0 }
 0x38c   : > { %v1564_v52 = vmax.f32 %v1506_v46, 0.0  ;;  %2706 = vmatprep.subr.bf16.mxu1 %v3792_v57 }
 0x38d   : > { %v1565_v50 = vmax.f32 %v1508_v47, 0.0 }
 0x38e   : > { %v1588_v53 = vpack.c.bf16 %v1564_v52, %v1562_v48 }
 0x38f   : > { %v1589_v54 = vpack.c.bf16 %v1565_v50, %v1563_v49  ;;  %v1511_v55 = vpop.f32.mrb[48].mxu0  ;;  %v3008_v49 = vld [vmem:[#allocation11 + $0x28] sm:$0xff]   ;;  %v3009_v50 = vld [vmem:[#allocation11 + $0x70] sm:$0xff]  }
 0x390   : > { %v1512_v58 = vadd.f32 %v1511_v55, %v3800_v59  ;;  %v1513_v61 = vpop.f32.mrb[49].mxu0  ;;  %2648 = vmatpush3.bf16.msra.mxu0 %v3008_v49  ;;  %2714 = vmatpush3.bf16.msra.mxu1 %v3008_v49 }
 0x391   : > { %v1514_v62 = vadd.f32 %v1513_v61, %v3803_v60  ;;  %v1515_v63 = vpop.f32.mrb[50].mxu0  ;;  %1864 = vmatprep.mubr.bf16.mxu1 %v1589_v54  ;;  %2649 = vmatprep.subr.bf16.mxu0 %v3009_v50  ;;  %v3012_v54 = vld [vmem:[#allocation11 + $0x38] sm:$0xff]  }
 0x392   : > { %v1516_v0 = vadd.f32 %v1515_v63, %v3800_v59  ;;  %v1517_v1 = vpop.f32.mrb[51].mxu0  ;;  %1865 = vmatmul.mubr.bf16.gmra.mrb[44].mxu1 %v1588_v53  ;;  %v1566_v2 = vmax.f32 %v1512_v58, 0.0  ;;  %v3010_v53 = vld [vmem:[#allocation11 + $0x30] sm:$0xff]   ;;  %2707 = vmatprep.subr.bf16.mxu1 %v3009_v50 }
 0x393   : > { %v1518_v56 = vadd.f32 %v1517_v1, %v3803_v60  ;;  %v1567_v3 = vmax.f32 %v1514_v62, 0.0 }
 0x394   : > { %v1568_v57 = vmax.f32 %v1516_v0, 0.0  ;;  %2650 = vmatpush3.bf16.msra.mxu0 %v3010_v53  ;;  %2715 = vmatpush3.bf16.msra.mxu1 %v3010_v53 }
 0x395   : > { %v1569_v4 = vmax.f32 %v1518_v56, 0.0 }
 0x396   : > { %v1590_v5 = vpack.c.bf16 %v1568_v57, %v1566_v2 }
 0x397   : > { %v1591_v6 = vpack.c.bf16 %v1569_v4, %v1567_v3  ;;  %v1521_v7 = vpop.f32.mrb[52].mxu0 }
 0x398   : > { %v1522_v8 = vadd.f32 %v1521_v7, %v3800_v59  ;;  %v1523_v9 = vpop.f32.mrb[53].mxu0 }
 0x399   : > { %v1524_v10 = vadd.f32 %v1523_v9, %v3803_v60  ;;  %v1525_v11 = vpop.f32.mrb[54].mxu0  ;;  %1874 = vmatprep.mubr.bf16.mxu1 %v1591_v6 }
 0x39a   : > { %v1526_v12 = vadd.f32 %v1525_v11, %v3800_v59  ;;  %v1527_v13 = vpop.f32.mrb[55].mxu0  ;;  %1875 = vmatmul.mubr.bf16.gmra.mrb[48].mxu1 %v1590_v5  ;;  %v1570_v15 = vmax.f32 %v1522_v8, 0.0 }
 0x39b   : > { %v1528_v14 = vadd.f32 %v1527_v13, %v3803_v60  ;;  %v1571_v17 = vmax.f32 %v1524_v10, 0.0 }
 0x39c   : > { %v1572_v16 = vmax.f32 %v1526_v12, 0.0 }
 0x39d   : > { %v1573_v18 = vmax.f32 %v1528_v14, 0.0 }
 0x39e   : > { %v1592_v19 = vpack.c.bf16 %v1572_v16, %v1570_v15 }
 0x39f   : > { %v1593_v26 = vpack.c.bf16 %v1573_v18, %v1571_v17  ;;  %v1531_v20 = vpop.f32.mrb[56].mxu0 }
 0x3a0   : > { %v1532_v21 = vadd.f32 %v1531_v20, %v3800_v59  ;;  %v1533_v27 = vpop.f32.mrb[57].mxu0 }
 0x3a1   : > { %v1534_v22 = vadd.f32 %v1533_v27, %v3803_v60  ;;  %v1535_v24 = vpop.f32.mrb[58].mxu0  ;;  %1884 = vmatprep.mubr.bf16.mxu1 %v1593_v26 }
 0x3a2   : > { %v1536_v28 = vadd.f32 %v1535_v24, %v3800_v59  ;;  %v1537_v29 = vpop.f32.mrb[59].mxu0  ;;  %1885 = vmatmul.mubr.bf16.gmra.mrb[52].mxu1 %v1592_v19  ;;  %v1574_v31 = vmax.f32 %v1532_v21, 0.0 }
 0x3a3   : > { %v1538_v30 = vadd.f32 %v1537_v29, %v3803_v60  ;;  %v1575_v33 = vmax.f32 %v1534_v22, 0.0 }
 0x3a4   : > { %v1576_v32 = vmax.f32 %v1536_v28, 0.0 }
 0x3a5   : > { %v1577_v34 = vmax.f32 %v1538_v30, 0.0 }
 0x3a6   : > { %v1594_v35 = vpack.c.bf16 %v1576_v32, %v1574_v31 }
 0x3a7   : > { %v1595_v36 = vpack.c.bf16 %v1577_v34, %v1575_v33  ;;  %v1541_v37 = vpop.f32.mrb[60].mxu0 }
 0x3a8   : > { %v1542_v38 = vadd.f32 %v1541_v37, %v3800_v59  ;;  %v1543_v39 = vpop.f32.mrb[61].mxu0 }
 0x3a9   : > { %v1544_v40 = vadd.f32 %v1543_v39, %v3803_v60  ;;  %v1545_v41 = vpop.f32.mrb[62].mxu0  ;;  %1894 = vmatprep.mubr.bf16.mxu1 %v1595_v36 }
 0x3aa   : > { %v1546_v42 = vadd.f32 %v1545_v41, %v3800_v59  ;;  %v1547_v43 = vpop.f32.mrb[63].mxu0  ;;  %1895 = vmatmul.mubr.bf16.gmra.mrb[56].mxu1 %v1594_v35  ;;  %v1578_v45 = vmax.f32 %v1542_v38, 0.0  ;;  %v3011_v59 = vld [vmem:[#allocation11 + $0x78] sm:$0xff]  }
 0x3ab   : > { %v1548_v44 = vadd.f32 %v1547_v43, %v3803_v60  ;;  %v1579_v51 = vmax.f32 %v1544_v40, 0.0  ;;  %2651 = vmatprep.subr.bf16.mxu0 %v3011_v59  ;;  %2708 = vmatprep.subr.bf16.mxu1 %v3011_v59  ;;  %v1630_v60 = vld [vmem:[%s4057_s30] sm:$0x3]  ;;  %s2351_s30 = sshll.u32 %s3910_s10, 4  ;;  %s3968_s30 = int_to_ptr.vmem [resolvable:$true] %s2351_s30 }
 0x3ac   : > { %v1580_v46 = vmax.f32 %v1546_v42, 0.0  ;;  %2652 = vmatpush3.bf16.msra.mxu0 %v3012_v54  ;;  %2716 = vmatpush3.bf16.msra.mxu1 %v3012_v54  ;;  %v3845_v55 = vrot.slane %v1630_v60, %v3698_v23  ;;  %v3848_v58 = vrot.slane %v1630_v60, %v3703_v25  ;;  %s3247_s15 = scalar_lea.vmem %s3968_s30, 2048 }
 0x3ad   : > { %v1581_v47 = vmax.f32 %v1548_v44, 0.0  ;;  %p3248_p7 = scmp.ne.s32.totalorder %s3968_s30, %s3247_s15 }
 0x3ae   : > { %v1596_v48 = vpack.c.bf16 %v1580_v46, %v1578_v45 }
 0x3af   : > { %v1597_v52 = vpack.c.bf16 %v1581_v47, %v1579_v51  ;;  %p3249_p12 = pnand %p3248_p7, %p4062_p4 }
 0x3b1   : > { %1904 = vmatprep.mubr.bf16.mxu1 %v1597_v52  ;;  %p3250_p1 = pneg %p3249_p12 }
 0x3b2   : > { %1905 = vmatmul.mubr.bf16.gmra.mrb[60].mxu1 %v1596_v48 }
 0x44d   : > { %v1836_v61 = vpop.f32.mrb[32].mxu1 }
 0x44e   : > { %v1837_v62 = vadd.f32 %v1836_v61, %v3845_v55  ;;  %v1838_v63 = vpop.f32.mrb[33].mxu1 }
 0x44f   : > { %v1839_v0 = vadd.f32 %v1838_v63, %v3848_v58  ;;  %v1840_v1 = vpop.f32.mrb[34].mxu1 }
 0x450   : > { %v1841_v56 = vadd.f32 %v1840_v1, %v3845_v55  ;;  %v1842_v2 = vpop.f32.mrb[35].mxu1  ;;  %v1915_v3 = vmax.f32 %v1837_v62, 0.0 }
 0x451   : > { %v1843_v57 = vadd.f32 %v1842_v2, %v3848_v58  ;;  %v1916_v5 = vmax.f32 %v1839_v0, 0.0 }
 0x452   : > { %v1917_v4 = vmax.f32 %v1841_v56, 0.0 }
 0x453   : > { %v1918_v23 = vmax.f32 %v1843_v57, 0.0 }
 0x454   : > { %v1947_v6 = vpack.c.bf16 %v1917_v4, %v1915_v3 }
 0x455   : > { %v1948_v7 = vpack.c.bf16 %v1918_v23, %v1916_v5  ;;  %v1846_v25 = vpop.f32.mrb[36].mxu1 }
 0x456   : > { %v1847_v8 = vadd.f32 %v1846_v25, %v3845_v55  ;;  %v1848_v9 = vpop.f32.mrb[37].mxu1 }
 0x457   : > { %v1849_v10 = vadd.f32 %v1848_v9, %v3848_v58  ;;  %v1850_v11 = vpop.f32.mrb[38].mxu1  ;;  %2130 = vmatprep.mubr.bf16.mxu0 %v1948_v7 }
 0x458   : > { %v1851_v12 = vadd.f32 %v1850_v11, %v3845_v55  ;;  %v1852_v13 = vpop.f32.mrb[39].mxu1  ;;  %2131 = vmatmul.mubr.bf16.vlgmr.msra.gmra.mrb[64].mxu0 %v1947_v6  ;;  %v1919_v15 = vmax.f32 %v1847_v8, 0.0 }
 0x459   : > { %v1853_v14 = vadd.f32 %v1852_v13, %v3848_v58  ;;  %v1920_v17 = vmax.f32 %v1849_v10, 0.0 }
 0x45a   : > { %v1921_v16 = vmax.f32 %v1851_v12, 0.0 }
 0x45b   : > { %v1922_v18 = vmax.f32 %v1853_v14, 0.0 }
 0x45c   : > { %v1949_v19 = vpack.c.bf16 %v1921_v16, %v1919_v15 }
 0x45d   : > { %v1950_v26 = vpack.c.bf16 %v1922_v18, %v1920_v17  ;;  %v1856_v20 = vpop.f32.mrb[40].mxu1 }
 0x45e   : > { %v1857_v21 = vadd.f32 %v1856_v20, %v3845_v55  ;;  %v1858_v27 = vpop.f32.mrb[41].mxu1 }
 0x45f   : > { %v1859_v22 = vadd.f32 %v1858_v27, %v3848_v58  ;;  %v1860_v24 = vpop.f32.mrb[42].mxu1  ;;  %2138 = vmatprep.mubr.bf16.mxu0 %v1950_v26 }
 0x460   : > { %v1861_v28 = vadd.f32 %v1860_v24, %v3845_v55  ;;  %v1862_v29 = vpop.f32.mrb[43].mxu1  ;;  %2139 = vmatmul.mubr.bf16.gmra.mrb[68].mxu0 %v1949_v19  ;;  %v1923_v31 = vmax.f32 %v1857_v21, 0.0 }
 0x461   : > { %v1863_v30 = vadd.f32 %v1862_v29, %v3848_v58  ;;  %v1924_v33 = vmax.f32 %v1859_v22, 0.0 }
 0x462   : > { %v1925_v32 = vmax.f32 %v1861_v28, 0.0 }
 0x463   : > { %v1926_v34 = vmax.f32 %v1863_v30, 0.0 }
 0x464   : > { %v1951_v35 = vpack.c.bf16 %v1925_v32, %v1923_v31 }
 0x465   : > { %v1952_v36 = vpack.c.bf16 %v1926_v34, %v1924_v33  ;;  %v1866_v37 = vpop.f32.mrb[44].mxu1 }
 0x466   : > { %v1867_v38 = vadd.f32 %v1866_v37, %v3845_v55  ;;  %v1868_v39 = vpop.f32.mrb[45].mxu1 }
 0x467   : > { %v1869_v40 = vadd.f32 %v1868_v39, %v3848_v58  ;;  %v1870_v41 = vpop.f32.mrb[46].mxu1  ;;  %2146 = vmatprep.mubr.bf16.mxu0 %v1952_v36 }
 0x468   : > { %v1871_v42 = vadd.f32 %v1870_v41, %v3845_v55  ;;  %v1872_v43 = vpop.f32.mrb[47].mxu1  ;;  %2147 = vmatmul.mubr.bf16.gmra.mrb[72].mxu0 %v1951_v35  ;;  %v1927_v45 = vmax.f32 %v1867_v38, 0.0 }
 0x469   : > { %v1873_v44 = vadd.f32 %v1872_v43, %v3848_v58  ;;  %v1928_v51 = vmax.f32 %v1869_v40, 0.0 }
 0x46a   : > { %v1929_v46 = vmax.f32 %v1871_v42, 0.0 }
 0x46b   : > { %v1930_v47 = vmax.f32 %v1873_v44, 0.0 }
 0x46c   : > { %v1953_v48 = vpack.c.bf16 %v1929_v46, %v1927_v45  ;;  %v3885_v46 = vld [vmem:[%s4058_s24] ss:$0 sm:$0xff]  ;;  %s4061_s24 = sld [smem:[#allocation24_spill]] }
 0x46d   : > { %v1954_v52 = vpack.c.bf16 %v1930_v47, %v1928_v51  ;;  %v1876_v49 = vpop.f32.mrb[48].mxu1 }
 0x46e   : > { %v1877_v50 = vadd.f32 %v1876_v49, %v3845_v55  ;;  %v1878_v53 = vpop.f32.mrb[49].mxu1 }
 0x46f   : > { %v1879_v59 = vadd.f32 %v1878_v53, %v3848_v58  ;;  %v1880_v54 = vpop.f32.mrb[50].mxu1  ;;  %2154 = vmatprep.mubr.bf16.mxu0 %v1954_v52 }
 0x470   : > { %v1881_v60 = vadd.f32 %v1880_v54, %v3845_v55  ;;  %v1882_v61 = vpop.f32.mrb[51].mxu1  ;;  %2155 = vmatmul.mubr.bf16.gmra.mrb[76].mxu0 %v1953_v48  ;;  %v1931_v63 = vmax.f32 %v1877_v50, 0.0 }
 0x471   : > { %v1883_v62 = vadd.f32 %v1882_v61, %v3848_v58  ;;  %v1932_v1 = vmax.f32 %v1879_v59, 0.0 }
 0x472   : > { %v1933_v0 = vmax.f32 %v1881_v60, 0.0  ;;  %s3966_s19 = scalar_lea.hbm %s4061_s24, %s2636_s21 }
 0x473   : > { %v1934_v56 = vmax.f32 %v1883_v62, 0.0 }
 0x474   : > { %v1955_v2 = vpack.c.bf16 %v1933_v0, %v1931_v63 }
 0x475   : > { %v1956_v57 = vpack.c.bf16 %v1934_v56, %v1932_v1  ;;  %v1886_v3 = vpop.f32.mrb[52].mxu1 }
 0x476   : > { %v1887_v4 = vadd.f32 %v1886_v3, %v3845_v55  ;;  %v1888_v5 = vpop.f32.mrb[53].mxu1 }
 0x477   : > { %v1889_v23 = vadd.f32 %v1888_v5, %v3848_v58  ;;  %v1890_v6 = vpop.f32.mrb[54].mxu1  ;;  %2162 = vmatprep.mubr.bf16.mxu0 %v1956_v57 }
 0x478   : > { %v1891_v7 = vadd.f32 %v1890_v6, %v3845_v55  ;;  %v1892_v25 = vpop.f32.mrb[55].mxu1  ;;  %2163 = vmatmul.mubr.bf16.gmra.mrb[80].mxu0 %v1955_v2  ;;  %v1935_v9 = vmax.f32 %v1887_v4, 0.0 }
 0x479   : > { %v1893_v8 = vadd.f32 %v1892_v25, %v3848_v58  ;;  %v1936_v11 = vmax.f32 %v1889_v23, 0.0 }
 0x47a   : > { %v1937_v10 = vmax.f32 %v1891_v7, 0.0 }
 0x47b   : > { %v1938_v12 = vmax.f32 %v1893_v8, 0.0 }
 0x47c   : > { %v1957_v13 = vpack.c.bf16 %v1937_v10, %v1935_v9 }
 0x47d   : > { %v1958_v14 = vpack.c.bf16 %v1938_v12, %v1936_v11  ;;  %v1896_v15 = vpop.f32.mrb[56].mxu1 }
 0x47e   : > { %v1897_v16 = vadd.f32 %v1896_v15, %v3845_v55  ;;  %v1898_v17 = vpop.f32.mrb[57].mxu1 }
 0x47f   : > { %v1899_v18 = vadd.f32 %v1898_v17, %v3848_v58  ;;  %v1900_v19 = vpop.f32.mrb[58].mxu1  ;;  %2170 = vmatprep.mubr.bf16.mxu0 %v1958_v14 }
 0x480   : > { %v1901_v26 = vadd.f32 %v1900_v19, %v3845_v55  ;;  %v1902_v20 = vpop.f32.mrb[59].mxu1  ;;  %2171 = vmatmul.mubr.bf16.gmra.mrb[84].mxu0 %v1957_v13  ;;  %v1939_v27 = vmax.f32 %v1897_v16, 0.0 }
 0x481   : > { %v1903_v21 = vadd.f32 %v1902_v20, %v3848_v58  ;;  %v1940_v24 = vmax.f32 %v1899_v18, 0.0 }
 0x482   : > { %v1941_v22 = vmax.f32 %v1901_v26, 0.0 }
 0x483   : > { %v1942_v28 = vmax.f32 %v1903_v21, 0.0 }
 0x484   : > { %v1959_v29 = vpack.c.bf16 %v1941_v22, %v1939_v27 }
 0x485   : > { %v1960_v30 = vpack.c.bf16 %v1942_v28, %v1940_v24  ;;  %v1906_v31 = vpop.f32.mrb[60].mxu1 }
 0x486   : > { %v1907_v32 = vadd.f32 %v1906_v31, %v3845_v55  ;;  %v1908_v33 = vpop.f32.mrb[61].mxu1 }
 0x487   : > { %v1909_v34 = vadd.f32 %v1908_v33, %v3848_v58  ;;  %v1910_v35 = vpop.f32.mrb[62].mxu1  ;;  %2178 = vmatprep.mubr.bf16.mxu1 %v1960_v30 }
 0x488   : > { %v1911_v36 = vadd.f32 %v1910_v35, %v3845_v55  ;;  %v1912_v37 = vpop.f32.mrb[63].mxu1  ;;  %2179 = vmatmul.mubr.bf16.vlgmr.msra.gmra.mrb[64].mxu1 %v1959_v29  ;;  %v1943_v39 = vmax.f32 %v1907_v32, 0.0 }
 0x489   : > { %v1913_v38 = vadd.f32 %v1912_v37, %v3848_v58  ;;  %v1944_v41 = vmax.f32 %v1909_v34, 0.0  ;;  %v3898_v34 = vld [vmem:[%s4059_s16] ss:$0 sm:$0xff]  ;;  %s3338_s16 = smov [#allocation13]  }
 0x48a   : > { %v1945_v40 = vmax.f32 %v1911_v36, 0.0  ;;  %s3251_s12 = sshll.u32 %s3338_s16, 4  ;;  %s3252_s12 = int_to_ptr.vmem [resolvable:$false] %s3251_s12 }
 0x48b   : > { %v1946_v42 = vmax.f32 %v1913_v38, 0.0  ;;  %s3253_s13 = scalar_lea.vmem %s3252_s12, 4096  ;;  %p3254_p13 = scmp.lt.s32.totalorder %s3968_s30, %s3252_s12 }
 0x48c   : > { %v1961_v43 = vpack.c.bf16 %v1945_v40, %v1943_v39  ;;  %v3904_v40 = vld [vmem:[%s4060_s20] ss:$0 sm:$0xff]  ;;  %p3255_p0 = scmp.lt.s32.totalorder %s3253_s13, %s3247_s15 }
 0x48d   : > { %v1962_v44 = vpack.c.bf16 %v1946_v42, %v1944_v41 }
 0x48e   : > { %p3256_p2 = por %p3255_p0, %p3254_p13 }
 0x48f   : > { %2186 = vmatprep.mubr.bf16.mxu1 %v1962_v44 }
 0x490   : > { %2187 = vmatmul.mubr.bf16.gmra.mrb[68].mxu1 %v1961_v43  ;;  %p3257_p8 = pnand %p3256_p2, %p3250_p1 }
 0x52b   : > { %v2653_v45 = vpop.f32.mrb[64].mxu0 }
 0x52c   : > { %v2654_v51 = vpop.f32.mrb[65].mxu0 }
 0x52d   : > { %v2655_v55 = vadd.f32 %v2654_v51, %v2653_v45  ;;  %v2656_v47 = vpop.f32.mrb[66].mxu0 }
 0x52e   : > { %v2657_v48 = vpop.f32.mrb[67].mxu0 }
 0x52f   : > { %v2133_v58 = vadd.f32 %v2655_v55, %v3885_v46  ;;  %v2658_v52 = vadd.f32 %v2657_v48, %v2656_v47 }
 0x531   : > { %v2195_v49 = vsub.f32 0.0, %v2133_v58  ;;  %v2136_v50 = vadd.f32 %v2658_v52, %v3885_v46 }
 0x533   : > { %v2211_v53 = vmul.f32 1.442695, %v2195_v49  ;;  %v2196_v59 = vsub.f32 0.0, %v2136_v50  ;;  %v2659_v54 = vpop.f32.mrb[68].mxu0 }
 0x534   : > { %v2660_v60 = vpop.f32.mrb[69].mxu0 }
 0x535   : > { %3013 = vpow2.f32 %v2211_v53  ;;  %v2213_v61 = vmul.f32 1.442695, %v2196_v59  ;;  %v2661_v62 = vadd.f32 %v2660_v60, %v2659_v54  ;;  %v2662_v63 = vpop.f32.mrb[70].mxu0 }
 0x536   : > { %v2663_v0 = vpop.f32.mrb[71].mxu0 }
 0x537   : > { %3015 = vpow2.f32 %v2213_v61  ;;  %v2141_v1 = vadd.f32 %v2661_v62, %v3885_v46  ;;  %v2664_v56 = vadd.f32 %v2663_v0, %v2662_v63 }
 0x539   : > { %v2197_v2 = vsub.f32 0.0, %v2141_v1  ;;  %v2144_v57 = vadd.f32 %v2664_v56, %v3885_v46 }
 0x53b   : > { %v2215_v3 = vmul.f32 1.442695, %v2197_v2  ;;  %v2198_v4 = vsub.f32 0.0, %v2144_v57  ;;  %v2665_v5 = vpop.f32.mrb[72].mxu0 }
 0x53c   : > { %v2666_v23 = vpop.f32.mrb[73].mxu0 }
 0x53d   : > { %3017 = vpow2.f32 %v2215_v3  ;;  %v2217_v6 = vmul.f32 1.442695, %v2198_v4  ;;  %v2667_v7 = vadd.f32 %v2666_v23, %v2665_v5  ;;  %v2668_v25 = vpop.f32.mrb[74].mxu0 }
 0x53e   : > { %v2669_v8 = vpop.f32.mrb[75].mxu0 }
 0x53f   : > { %v3014_v9 = vpop.eup %3013  ;;  %3019 = vpow2.f32 %v2217_v6  ;;  %v2149_v10 = vadd.f32 %v2667_v7, %v3885_v46  ;;  %v2670_v11 = vadd.f32 %v2669_v8, %v2668_v25 }
 0x540   : > { %v2243_v12 = vadd.f32 1.0, %v3014_v9 }
 0x541   : > { %v3016_v13 = vpop.eup %3015  ;;  %v2199_v14 = vsub.f32 0.0, %v2149_v10  ;;  %v2152_v15 = vadd.f32 %v2670_v11, %v3885_v46 }
 0x542   : > { %3021 = vrcp.f32 %v2243_v12  ;;  %v2244_v16 = vadd.f32 1.0, %v3016_v13 }
 0x543   : > { %v2219_v17 = vmul.f32 1.442695, %v2199_v14  ;;  %v2200_v18 = vsub.f32 0.0, %v2152_v15  ;;  %v2671_v19 = vpop.f32.mrb[76].mxu0 }
 0x544   : > { %3023 = vrcp.f32 %v2244_v16  ;;  %v2672_v26 = vpop.f32.mrb[77].mxu0 }
 0x545   : > { %3025 = vpow2.f32 %v2219_v17  ;;  %v2221_v20 = vmul.f32 1.442695, %v2200_v18  ;;  %v2673_v21 = vadd.f32 %v2672_v26, %v2671_v19  ;;  %v2674_v27 = vpop.f32.mrb[78].mxu0 }
 0x546   : > { %v2675_v22 = vpop.f32.mrb[79].mxu0 }
 0x547   : > { %v3018_v24 = vpop.eup %3017  ;;  %3027 = vpow2.f32 %v2221_v20  ;;  %v2157_v28 = vadd.f32 %v2673_v21, %v3885_v46  ;;  %v2676_v29 = vadd.f32 %v2675_v22, %v2674_v27 }
 0x548   : > { %v2245_v30 = vadd.f32 1.0, %v3018_v24 }
 0x549   : > { %v3020_v31 = vpop.eup %3019  ;;  %v2201_v32 = vsub.f32 0.0, %v2157_v28  ;;  %v2160_v33 = vadd.f32 %v2676_v29, %v3885_v46 }
 0x54a   : > { %3029 = vrcp.f32 %v2245_v30  ;;  %v2246_v35 = vadd.f32 1.0, %v3020_v31 }
 0x54b   : > { %v2223_v36 = vmul.f32 1.442695, %v2201_v32  ;;  %v2202_v37 = vsub.f32 0.0, %v2160_v33  ;;  %v2677_v38 = vpop.f32.mrb[80].mxu0 }
 0x54c   : > { %v3022_v39 = vpop.eup %3021  ;;  %3031 = vrcp.f32 %v2246_v35  ;;  %v2678_v41 = vpop.f32.mrb[81].mxu0 }
 0x54d   : > { %v2282_v42 = vmul.f32 %v3022_v39, %v3898_v34  ;;  %3033 = vpow2.f32 %v2223_v36  ;;  %v2225_v43 = vmul.f32 1.442695, %v2202_v37  ;;  %v2679_v44 = vadd.f32 %v2678_v41, %v2677_v38  ;;  %v2680_v45 = vpop.f32.mrb[82].mxu0 }
 0x54e   : > { %v3024_v51 = vpop.eup %3023  ;;  %v2681_v55 = vpop.f32.mrb[83].mxu0 }
 0x54f   : > { %v3026_v47 = vpop.eup %3025  ;;  %v2305_v48 = vadd.f32 %v3904_v40, %v2282_v42  ;;  %v2283_v58 = vmul.f32 %v3024_v51, %v3898_v34  ;;  %3035 = vpow2.f32 %v2225_v43  ;;  %v2165_v52 = vadd.f32 %v2679_v44, %v3885_v46 }
 0x550   : > { %v2247_v49 = vadd.f32 1.0, %v3026_v47  ;;  %v2682_v50 = vadd.f32 %v2681_v55, %v2680_v45 }
 0x551   : > { %v3028_v53 = vpop.eup %3027  ;;  %2321 = vst [vmem:[%s3910_s10] sm:$0xff] %v2305_v48  ;;  %v2306_v59 = vadd.f32 %v3904_v40, %v2283_v58  ;;  %v2203_v54 = vsub.f32 0.0, %v2165_v52 }
 0x552   : > { %3037 = vrcp.f32 %v2247_v49  ;;  %v2248_v60 = vadd.f32 1.0, %v3028_v53  ;;  %v2168_v61 = vadd.f32 %v2682_v50, %v3885_v46 }
 0x553   : > { %2322 = vst [vmem:[%s3910_s10 + $0x8] sm:$0xff] %v2306_v59  ;;  %v2227_v62 = vmul.f32 1.442695, %v2203_v54  ;;  %v2683_v63 = vpop.f32.mrb[84].mxu0 }
 0x554   : > { %v3030_v0 = vpop.eup %3029  ;;  %3039 = vrcp.f32 %v2248_v60  ;;  %v2204_v1 = vsub.f32 0.0, %v2168_v61  ;;  %v2684_v56 = vpop.f32.mrb[85].mxu0 }
 0x555   : > { %v2284_v2 = vmul.f32 %v3030_v0, %v3898_v34  ;;  %3041 = vpow2.f32 %v2227_v62  ;;  %v2685_v57 = vadd.f32 %v2684_v56, %v2683_v63  ;;  %v2686_v3 = vpop.f32.mrb[86].mxu0 }
 0x556   : > { %v3032_v4 = vpop.eup %3031  ;;  %v2229_v5 = vmul.f32 1.442695, %v2204_v1  ;;  %v2687_v23 = vpop.f32.mrb[87].mxu0 }
 0x557   : > { %v3034_v6 = vpop.eup %3033  ;;  %v2307_v7 = vadd.f32 %v3904_v40, %v2284_v2  ;;  %v2285_v25 = vmul.f32 %v3032_v4, %v3898_v34  ;;  %v2173_v8 = vadd.f32 %v2685_v57, %v3885_v46  ;;  %v2688_v9 = vadd.f32 %v2687_v23, %v2686_v3 }
 0x558   : > { %v2249_v10 = vadd.f32 1.0, %v3034_v6  ;;  %3043 = vpow2.f32 %v2229_v5 }
 0x559   : > { %v3036_v11 = vpop.eup %3035  ;;  %2323 = vst [vmem:[%s3910_s10 + $0x10] sm:$0xff] %v2307_v7  ;;  %v2308_v12 = vadd.f32 %v3904_v40, %v2285_v25  ;;  %v2205_v13 = vsub.f32 0.0, %v2173_v8  ;;  %v2176_v14 = vadd.f32 %v2688_v9, %v3885_v46 }
 0x55a   : > { %3045 = vrcp.f32 %v2249_v10  ;;  %v2250_v15 = vadd.f32 1.0, %v3036_v11 }
 0x55b   : > { %2324 = vst [vmem:[%s3910_s10 + $0x18] sm:$0xff] %v2308_v12  ;;  %v2231_v16 = vmul.f32 1.442695, %v2205_v13  ;;  %v2206_v17 = vsub.f32 0.0, %v2176_v14  ;;  %v2689_v18 = vpop.f32.mrb[64].mxu1 }
 0x55c   : > { %v3038_v19 = vpop.eup %3037  ;;  %3047 = vrcp.f32 %v2250_v15  ;;  %v2690_v26 = vpop.f32.mrb[65].mxu1 }
 0x55d   : > { %v2286_v20 = vmul.f32 %v3038_v19, %v3898_v34  ;;  %3049 = vpow2.f32 %v2231_v16  ;;  %v2233_v21 = vmul.f32 1.442695, %v2206_v17  ;;  %v2691_v27 = vadd.f32 %v2690_v26, %v2689_v18  ;;  %v2692_v22 = vpop.f32.mrb[66].mxu1 }
 0x55e   : > { %v3040_v24 = vpop.eup %3039  ;;  %v2693_v28 = vpop.f32.mrb[67].mxu1 }
 0x55f   : > { %v3042_v29 = vpop.eup %3041  ;;  %v2309_v30 = vadd.f32 %v3904_v40, %v2286_v20  ;;  %v2287_v31 = vmul.f32 %v3040_v24, %v3898_v34  ;;  %3051 = vpow2.f32 %v2233_v21  ;;  %v2181_v32 = vadd.f32 %v2691_v27, %v3885_v46 }
 0x560   : > { %v2251_v33 = vadd.f32 1.0, %v3042_v29  ;;  %v2694_v35 = vadd.f32 %v2693_v28, %v2692_v22 }
 0x561   : > { %2325 = vst [vmem:[%s3910_s10 + $0x20] sm:$0xff] %v2309_v30  ;;  %v2310_v36 = vadd.f32 %v3904_v40, %v2287_v31  ;;  %v2207_v37 = vsub.f32 0.0, %v2181_v32 }
 0x562   : > { %v3044_v38 = vpop.eup %3043  ;;  %3053 = vrcp.f32 %v2251_v33  ;;  %v2184_v39 = vadd.f32 %v2694_v35, %v3885_v46 }
 0x563   : > { %2326 = vst [vmem:[%s3910_s10 + $0x28] sm:$0xff] %v2310_v36  ;;  %v2252_v41 = vadd.f32 1.0, %v3044_v38  ;;  %v2235_v42 = vmul.f32 1.442695, %v2207_v37  ;;  %v2695_v43 = vpop.f32.mrb[68].mxu1 }
 0x564   : > { %v3046_v44 = vpop.eup %3045  ;;  %v2208_v45 = vsub.f32 0.0, %v2184_v39  ;;  %v2696_v51 = vpop.f32.mrb[69].mxu1 }
 0x565   : > { %v2288_v55 = vmul.f32 %v3046_v44, %v3898_v34  ;;  %3055 = vrcp.f32 %v2252_v41  ;;  %v2697_v47 = vadd.f32 %v2696_v51, %v2695_v43  ;;  %v2698_v48 = vpop.f32.mrb[70].mxu1 }
 0x566   : > { %v3048_v58 = vpop.eup %3047  ;;  %3057 = vpow2.f32 %v2235_v42  ;;  %v2237_v52 = vmul.f32 1.442695, %v2208_v45  ;;  %v2699_v49 = vpop.f32.mrb[71].mxu1 }
 0x567   : > { %v3050_v50 = vpop.eup %3049  ;;  %v2311_v53 = vadd.f32 %v3904_v40, %v2288_v55  ;;  %v2289_v59 = vmul.f32 %v3048_v58, %v3898_v34  ;;  %v2189_v54 = vadd.f32 %v2697_v47, %v3885_v46  ;;  %v2700_v60 = vadd.f32 %v2699_v49, %v2698_v48 }
 0x568   : > { %v2253_v61 = vadd.f32 1.0, %v3050_v50  ;;  %3059 = vpow2.f32 %v2237_v52 }
 0x569   : > { %v3052_v62 = vpop.eup %3051  ;;  %2327 = vst [vmem:[%s3910_s10 + $0x30] sm:$0xff] %v2311_v53  ;;  %v2312_v63 = vadd.f32 %v3904_v40, %v2289_v59  ;;  %v2209_v0 = vsub.f32 0.0, %v2189_v54  ;;  %v2192_v1 = vadd.f32 %v2700_v60, %v3885_v46 }
 0x56a   : > { %3061 = vrcp.f32 %v2253_v61  ;;  %v2254_v56 = vadd.f32 1.0, %v3052_v62 }
 0x56b   : > { %2328 = vst [vmem:[%s3910_s10 + $0x38] sm:$0xff] %v2312_v63  ;;  %v2239_v2 = vmul.f32 1.442695, %v2209_v0  ;;  %v2210_v57 = vsub.f32 0.0, %v2192_v1 }
 0x56c   : > { %v3054_v3 = vpop.eup %3053  ;;  %3063 = vrcp.f32 %v2254_v56 }
 0x56d   : > { %v2290_v4 = vmul.f32 %v3054_v3, %v3898_v34  ;;  %3065 = vpow2.f32 %v2239_v2  ;;  %v2241_v5 = vmul.f32 1.442695, %v2210_v57 }
 0x56f   : > { %v3056_v23 = vpop.eup %3055  ;;  %v2313_v6 = vadd.f32 %v3904_v40, %v2290_v4  ;;  %3067 = vpow2.f32 %v2241_v5 }
 0x570   : > { %v3058_v7 = vpop.eup %3057  ;;  %v2291_v46 = vmul.f32 %v3056_v23, %v3898_v34 }
 0x571   : > { %2329 = vst [vmem:[%s3910_s10 + $0x40] sm:$0xff] %v2313_v6  ;;  %v2255_v25 = vadd.f32 1.0, %v3058_v7 }
 0x572   : > { %v3060_v8 = vpop.eup %3059  ;;  %v2314_v9 = vadd.f32 %v3904_v40, %v2291_v46 }
 0x573   : > { %3069 = vrcp.f32 %v2255_v25  ;;  %v2256_v10 = vadd.f32 1.0, %v3060_v8 }
 0x574   : > { %v3062_v11 = vpop.eup %3061  ;;  %2330 = vst [vmem:[%s3910_s10 + $0x48] sm:$0xff] %v2314_v9 }
 0x575   : > { %v2292_v12 = vmul.f32 %v3062_v11, %v3898_v34  ;;  %3071 = vrcp.f32 %v2256_v10 }
 0x576   : > { %v3064_v13 = vpop.eup %3063 }
 0x577   : > { %v3066_v14 = vpop.eup %3065  ;;  %v2315_v15 = vadd.f32 %v3904_v40, %v2292_v12  ;;  %v2293_v16 = vmul.f32 %v3064_v13, %v3898_v34 }
 0x578   : > { %v2257_v17 = vadd.f32 1.0, %v3066_v14 }
 0x579   : > { %v3068_v18 = vpop.eup %3067  ;;  %2331 = vst [vmem:[%s3910_s10 + $0x50] sm:$0xff] %v2315_v15  ;;  %v2316_v19 = vadd.f32 %v3904_v40, %v2293_v16 }
 0x57a   : > { %3073 = vrcp.f32 %v2257_v17  ;;  %v2258_v26 = vadd.f32 1.0, %v3068_v18 }
 0x57b   : > { %2332 = vst [vmem:[%s3910_s10 + $0x58] sm:$0xff] %v2316_v19 }
 0x57c   : > { %3075 = vrcp.f32 %v2258_v26 }
 0x57d   : > { %v3070_v20 = vpop.eup %3069 }
 0x57e   : > { %v2294_v21 = vmul.f32 %v3070_v20, %v3898_v34 }
 0x57f   : > { %v3072_v27 = vpop.eup %3071 }
 0x580   : > { %v2317_v22 = vadd.f32 %v3904_v40, %v2294_v21  ;;  %v2295_v24 = vmul.f32 %v3072_v27, %v3898_v34 }
 0x582   : > { %2333 = vst [vmem:[%s3910_s10 + $0x60] sm:$0xff] %v2317_v22  ;;  %v2318_v28 = vadd.f32 %v3904_v40, %v2295_v24 }
 0x584   : > { %v3074_v29 = vpop.eup %3073  ;;  %2334 = vst [vmem:[%s3910_s10 + $0x68] sm:$0xff] %v2318_v28 }
 0x585   : > { %v2296_v30 = vmul.f32 %v3074_v29, %v3898_v34 }
 0x586   : > { %v3076_v31 = vpop.eup %3075 }
 0x587   : > { %v2319_v32 = vadd.f32 %v3904_v40, %v2296_v30  ;;  %v2297_v33 = vmul.f32 %v3076_v31, %v3898_v34 }
 0x589   : > { %2335 = vst [vmem:[%s3910_s10 + $0x70] sm:$0xff] %v2319_v32  ;;  %v2320_v35 = vadd.f32 %v3904_v40, %v2297_v33 }
 0x58b   : > { %2336 = vst [vmem:[%s3910_s10 + $0x78] sm:$0xff] %v2320_v35 }
 0x58c   : > { %3260 = shalt.err (!%p3257_p8)
}
 0x58d   : > { %s3261_s8 = scalar_lea.hbm %s3966_s19, 2048  ;;  %s3265_s21 = scalar_lea.hbm %s4061_s24, 4096 }
 0x58e   : > { %p3262_p6 = scmp.ne.s32.totalorder %s3966_s19, %s3261_s8  ;;  %p3266_p3 = scmp.lt.u32.totalorder %s3966_s19, %s4061_s24 }
 0x58f   : > { %p3267_p5 = scmp.lt.u32.totalorder %s3265_s21, %s3261_s8  ;;  %p3269_p7 = scmp.lt.u32.totalorder %s3261_s8, %s3966_s19 }
 0x590   : > { %p3263_p10 = pnand %p3262_p6, %p4062_p4 }
 0x591   : > { %p3268_p9 = por %p3267_p5, %p3266_p3 }
 0x592   : > { %p3264_p11 = pneg %p3263_p10 }
 0x593   : > { %p3270_p12 = por %p3269_p7, %p3268_p9 }
 0x595   : > { %p3271_p1 = pnand %p3270_p12, %p3264_p11 }
 0x597   : > { %3274 = shalt.err (!%p3271_p1)
}
 0x598   : > { %s3339_s15 = smov 128   ;;  %s3340_s16 = smov 8  }
 0x599   : > { %2739 = dma.vmem_to_hbm [thread:$0]  (%p4062_p4), %s3968_s30, 2048, %s3966_s19, %s2338_s14, %s3339_s15, %s3339_s15, %s3340_s16  }
 0x59a PF: > { %s2366_s12 = sand.u32 1, %s3313_s25   ;;  %p4063_p13 = scmp.ne.s32.totalorder %s4047_s29, 0 }
 0x59b   : > { %p4064_p0 = scmp.ge.s32.totalorder %s3325_s28, 2  ;;  %s2367_s13 = scalar_lea.sflag [#allocation4], %s2366_s12 }
 0x59d   : > { %p2762_p2 = pnand %p4064_p0, %p4063_p13 }
 0x59f   : > { %3308 = dma.done.wait (!%p2762_p2), %s2367_s13, 2048  }
 0x5a0   : > { %3310 = vsyncadd (!%p2762_p2), %s2367_s13, 4294965248  ;;  %p29_p8 = scmp.ge.s32.totalorder %s3584_s1, 4   ;;  %s4065_s25 = smov %s3317_s26 }
 0x5a1   : > { %s4066_s26 = smov %s3321_s27  ;;  %s4067_s27 = smov %s3596_s18 }
 0x5a2   : > { %s4068_s28 = smov %s3584_s1  ;;  %31 = sbr.rel (!%p29_p8) target bundleno = 15 (0xf), region = 137 }
 0x5a9   :  { %2372 = vsyncpa [#allocation3], 1 }
 0x5aa   :  { %2374 = vsyncpa [#allocation3 + $0x1], 1 }
 0x5ab   :  { %2375 = vsyncpa [#allocation6], 1 }
 0x5ac   :  { %2376 = vsyncpa [#allocation9], 1 }
 0x5ad   :  { %2377 = vsyncpa [#allocation12], 1 }
 0x5ae   :  { %2378 = vsyncpa [#allocation4], 1 }
 0x5af   :  { %2380 = vsyncpa [#allocation4 + $0x1], 1 }

</bundles_post_ra>
